<compile_context>
chip_gen: v7x
topology: tpu7x:2x2x1
jax: 0.10.0
libtpu: 0.0.40
codegen_flags: <defaults>
</compile_context>

<pallas_src>
import functools
import math

import numpy as np
import jax
import jax.numpy as jnp
from jax import lax
from jax.experimental import pallas as pl
from jax.experimental.pallas import tpu as pltpu

# ---- sizes (small, TPU-lane friendly) ----
B = 8      # batch block per grid step; total batch must be a multiple of B
E = 128    # input_encoding_size
R = 128    # rnn_size == d_model
L = 16     # number of attended regions
H = 4      # num_heads
DK = R // H
EPS_LN = 1e-6


def _attn_compute_dtype():
    """bf16 attention elementwise/exp only on chips with a bf16 VPU/EUP (v6e, v7x)."""
    try:
        kind = jax.devices()[0].device_kind.lower()
    except Exception:
        return jnp.float32
    return jnp.bfloat16 if ("v6" in kind or "v7" in kind) else jnp.float32


ATTN_DTYPE = _attn_compute_dtype()


def aoa_decoder_core_kernel(
    xt_ref, mean_ref, value_ref, key_ref, h_init_ref, c_init_ref,
    w_lstm_ref, b_lstm_ref, ln_a_ref, ln_b_ref,
    wq_ref, bq_ref, wctx_ref, bctx_ref, block_ones_ref,
    out_ref, h_state_ref, c_state_ref,
    *, attn_dtype,
):
    f32 = jnp.float32
    bf16 = jnp.bfloat16
    T = xt_ref.shape[0]

    # ---- loop-invariant loads / broadcasts, hoisted out of the time loop ----
    mean_feats = mean_ref[...]                                   # (B, R)
    value_feats = value_ref[...]                                 # (B, L, R) attn dtype
    key_feats = key_ref[...]                                     # (B, L, R) attn dtype
    b_lstm = jnp.broadcast_to(b_lstm_ref[...], (B, 4 * R))
    ln_a = jnp.broadcast_to(ln_a_ref[...], (B, R))
    ln_b = jnp.broadcast_to(ln_b_ref[...], (B, R))
    bq = jnp.broadcast_to(bq_ref[...], (B, R))
    bctx = jnp.broadcast_to(bctx_ref[...], (B, 2 * R))

    def step(t, carry):
        h0, h1, c0 = carry                                       # (B, R) f32 each

        # -------- fused att_lstm (nn.LSTMCell), gate columns pre-permuted [i, f, o, g] --------
        # TODO(synk): ctx_drop / out_drop / attention dropout are identity (eval mode only).
        xt = xt_ref[t, :, :]                                     # (B, E)
        x_h = mean_feats + h1
        xcat = jnp.concatenate([xt, x_h, h0], axis=-1)           # (B, E+2R)
        gates = jnp.dot(xcat.astype(bf16), w_lstm_ref[...],
                        preferred_element_type=f32) + b_lstm     # (B, 4R)
        sig = jax.nn.sigmoid(gates[:, :3 * R])                   # one wide sigmoid slab
        i_g = sig[:, 0 * R:1 * R]
        f_g = sig[:, 1 * R:2 * R]
        o_g = sig[:, 2 * R:3 * R]
        g_g = jnp.tanh(gates[:, 3 * R:4 * R])
        c_att = f_g * c0 + i_g * g_g
        h_att = o_g * jnp.tanh(c_att)

        # -------- LayerNorm (torch semantics: unbiased std, eps outside sqrt) + q proj --------
        mean_q = jnp.mean(h_att, axis=-1, keepdims=True)
        xc = h_att - mean_q
        std = jnp.sqrt(jnp.sum(xc * xc, axis=-1, keepdims=True) * (1.0 / (R - 1)))
        q_norm = ln_a * xc * pl.reciprocal(std + EPS_LN, approx=True) + ln_b
        q_proj = jnp.dot(q_norm.astype(bf16), wq_ref[...],
                         preferred_element_type=f32) + bq        # (B, R)

        # -------- multi-head attention without per-head slicing / tiny matmuls --------
        # Per-head scores via ONE bf16 block-diagonal (128x128) matmul (scale baked in),
        # broadcast over each head's DK lanes; softmax over L; value sum over L; the
        # per-head denominator is lane-replicated so one exact (B,R) divide normalizes.
        # TODO(synk): att_masks path not implemented (module is used with mask=None).
        prod = key_feats * q_proj.astype(attn_dtype)[:, None, :]                  # (B, L, R)
        s_full = jnp.dot(prod.reshape(B * L, R).astype(bf16), block_ones_ref[...],
                         preferred_element_type=f32).reshape(B, L, R)
        m = jnp.max(s_full, axis=1, keepdims=True)
        p = jnp.exp((s_full - m).astype(attn_dtype))                               # (B, L, R)
        denom = jnp.sum(p.astype(f32), axis=1)                                     # (B, R)
        att_un = jnp.sum((p * value_feats).astype(f32), axis=1)                    # (B, R)
        att = att_un / denom                                                       # exact

        # -------- fused att2ctx: Linear(2R -> 2R) + GLU --------
        ctx_in = jnp.concatenate([att.astype(bf16), h_att.astype(bf16)], axis=-1)  # (B, 2R)
        ctx = jnp.dot(ctx_in, wctx_ref[...], preferred_element_type=f32) + bctx
        output = ctx[:, :R] * jax.nn.sigmoid(ctx[:, R:])

        out_ref[t, :, :] = output
        return (h_att, output, c_att)

    h0_f, h1_f, c0_f = lax.fori_loop(
        0, T, step, (h_init_ref[0], h_init_ref[1], c_init_ref[0]))

    h_state_ref[0, :, :] = h0_f
    h_state_ref[1, :, :] = h1_f
    c_state_ref[0, :, :] = c0_f
    c_state_ref[1, :, :] = c_init_ref[1]      # torch passes c1 through unchanged


@jax.jit
def aoa_decoder_core_seq(xt_seq, mean_feats, p_att_feats, state, params):
    """Run T sequential decode steps in ONE pallas_call.

    The time loop lives inside the kernel (no per-timestep pipeline overhead); the grid
    iterates over independent batch blocks of 8, marked "parallel" (fills both v7x
    TensorCores / the MXU M dim when total batch = n*8 > 8).
    """
    T, Btot, _ = xt_seq.shape
    assert Btot % B == 0
    nb = Btot // B
    h_prev, c_prev = state
    value = p_att_feats[:, :, :R].astype(ATTN_DTYPE)   # torch: narrow(2, 0, R)  -> value
    key = p_att_feats[:, :, R:].astype(ATTN_DTYPE)     # torch: narrow(2, R, R)  -> key

    inputs = (
        xt_seq, mean_feats, value, key, h_prev, c_prev,
        params['w_lstm'], params['b_lstm'], params['ln_a'], params['ln_b'],
        params['wq'], params['bq'], params['wctx'], params['bctx'],
        params['block_ones'],
    )

    const2 = lambda b: (0, 0)
    in_specs = [
        pl.BlockSpec((T, B, E), lambda b: (0, b, 0)),          # xt sequence (per batch block)
        pl.BlockSpec((B, R), lambda b: (b, 0)),                # mean_feats
        pl.BlockSpec((B, L, R), lambda b: (b, 0, 0)),          # value
        pl.BlockSpec((B, L, R), lambda b: (b, 0, 0)),          # key
        pl.BlockSpec((2, B, R), lambda b: (0, b, 0)),          # h_init
        pl.BlockSpec((2, B, R), lambda b: (0, b, 0)),          # c_init
        pl.BlockSpec((E + 2 * R, 4 * R), const2),              # fused LSTM weight (bf16)
        pl.BlockSpec((1, 4 * R), const2),                      # fused LSTM bias
        pl.BlockSpec((1, R), const2),                          # ln a_2
        pl.BlockSpec((1, R), const2),                          # ln b_2
        pl.BlockSpec((R, R), const2),                          # wq (bf16)
        pl.BlockSpec((1, R), const2),                          # bq
        pl.BlockSpec((2 * R, 2 * R), const2),                  # fused att2ctx weight (bf16)
        pl.BlockSpec((1, 2 * R), const2),                      # att2ctx bias
        pl.BlockSpec((R, R), const2),                          # block-diag head-sum (bf16)
    ]
    out_specs = (
        pl.BlockSpec((T, B, R), lambda b: (0, b, 0)),          # per-step outputs
        pl.BlockSpec((2, B, R), lambda b: (0, b, 0)),          # h state
        pl.BlockSpec((2, B, R), lambda b: (0, b, 0)),          # c state
    )
    out_shape = (
        jax.ShapeDtypeStruct((T, Btot, R), jnp.float32),
        jax.ShapeDtypeStruct((2, Btot, R), jnp.float32),
        jax.ShapeDtypeStruct((2, Btot, R), jnp.float32),
    )
    kernel = functools.partial(aoa_decoder_core_kernel, attn_dtype=ATTN_DTYPE)
    out_seq, h_new, c_new = pl.pallas_call(
        kernel,
        grid=(nb,),
        in_specs=in_specs,
        out_specs=out_specs,
        out_shape=out_shape,
        input_output_aliases={4: 1, 5: 2},   # h_prev -> h_new, c_prev -> c_new (in place)
        compiler_params=pltpu.CompilerParams(dimension_semantics=("parallel",)),
    )(*inputs)
    return out_seq, (h_new, c_new)


def aoa_decoder_core(xt, mean_feats, p_att_feats, state, params):
    """Single decode step (matches AoA_Decoder_Core.forward): the T=1 case."""
    out_seq, new_state = aoa_decoder_core_seq(
        xt[None], mean_feats, p_att_feats, state, params)
    return out_seq[0], new_state


def init_raw_params(key):
    """Deterministic synthetic parameters in the torch module's native layout."""
    ks = jax.random.split(key, 8)
    s = 0.05
    return dict(
        w_ih=jax.random.normal(ks[0], (4 * R, E + R), jnp.float32) * s,   # LSTMCell weight_ih
        w_hh=jax.random.normal(ks[1], (4 * R, R), jnp.float32) * s,       # LSTMCell weight_hh
        b_ih=jax.random.normal(ks[2], (4 * R,), jnp.float32) * s,
        b_hh=jax.random.normal(ks[3], (4 * R,), jnp.float32) * s,
        ln_a=jnp.ones((R,), jnp.float32),                                  # LayerNorm a_2
        ln_b=jnp.zeros((R,), jnp.float32),                                 # LayerNorm b_2
        wq=jax.random.normal(ks[4], (R, R), jnp.float32) * s,              # attention.linears[0]
        bq=jax.random.normal(ks[5], (R,), jnp.float32) * s,
        wctx=jax.random.normal(ks[6], (2 * R, 2 * R), jnp.float32) * s,    # att2ctx Linear
        bctx=jax.random.normal(ks[7], (2 * R,), jnp.float32) * s,
    )


def pack_params(raw):
    """Torch-layout params -> fused / permuted / bf16 kernel params."""
    w_ih_T = raw['w_ih'].T                                      # (E+R, 4R)
    # Row order must match the in-kernel concat [xt, mean_feats + h1, h0].
    w_lstm = jnp.concatenate([w_ih_T[:E], w_ih_T[E:], raw['w_hh'].T], axis=0)  # (E+2R, 4R)
    # Reorder gate columns from PyTorch [i, f, g, o] to [i, f, o, g].
    perm = jnp.concatenate([jnp.arange(0, 2 * R),
                            jnp.arange(3 * R, 4 * R),
                            jnp.arange(2 * R, 3 * R)])
    w_lstm = w_lstm[:, perm].astype(jnp.bfloat16)
    b_lstm = (raw['b_ih'] + raw['b_hh'])[perm][None, :].astype(jnp.float32)

    # Block-diagonal matrix producing per-head segment sums (scaled by 1/sqrt(d_k)),
    # broadcast across each head's DK lanes.  Stored bf16 (MXU operand).
    idx = jnp.arange(R)
    block_ones = jnp.where((idx[:, None] // DK) == (idx[None, :] // DK),
                           1.0 / math.sqrt(DK), 0.0).astype(jnp.bfloat16)

    return dict(
        w_lstm=w_lstm,
        b_lstm=b_lstm,
        ln_a=raw['ln_a'][None, :].astype(jnp.float32),
        ln_b=raw['ln_b'][None, :].astype(jnp.float32),
        wq=raw['wq'].T.astype(jnp.bfloat16),
        bq=raw['bq'][None, :].astype(jnp.float32),
        wctx=raw['wctx'].T.astype(jnp.bfloat16),
        bctx=raw['bctx'][None, :].astype(jnp.float32),
        block_ones=block_ones,
    )


def reference(xt, mean_feats, p_att_feats, h_prev, c_prev, raw):
    """Pure-JAX (f32) mirror of the torch forward pass (eval mode)."""
    h0, h1 = h_prev[0], h_prev[1]
    c0, c1 = c_prev[0], c_prev[1]
    x_in = jnp.concatenate([xt, mean_feats + h1], axis=-1)
    gates = x_in @ raw['w_ih'].T + h0 @ raw['w_hh'].T + raw['b_ih'] + raw['b_hh']
    i_g = jax.nn.sigmoid(gates[:, 0 * R:1 * R])
    f_g = jax.nn.sigmoid(gates[:, 1 * R:2 * R])
    g_g = jnp.tanh(gates[:, 2 * R:3 * R])
    o_g = jax.nn.sigmoid(gates[:, 3 * R:4 * R])
    c_att = f_g * c0 + i_g * g_g
    h_att = o_g * jnp.tanh(c_att)

    mean_q = jnp.mean(h_att, axis=-1, keepdims=True)
    xc = h_att - mean_q
    std = jnp.sqrt(jnp.sum(xc * xc, axis=-1, keepdims=True) / (R - 1))
    q_norm = raw['ln_a'] * xc / (std + EPS_LN) + raw['ln_b']
    q_proj = q_norm @ raw['wq'].T + raw['bq']

    value = p_att_feats[:, :, :R].reshape(B, L, H, DK).transpose(0, 2, 1, 3)
    key_ = p_att_feats[:, :, R:].reshape(B, L, H, DK).transpose(0, 2, 1, 3)
    q_h = q_proj.reshape(B, 1, H, DK).transpose(0, 2, 1, 3)
    scores = jnp.einsum('bhqd,bhkd->bhqk', q_h, key_) / math.sqrt(DK)
    p_attn = jax.nn.softmax(scores, axis=-1)
    att = jnp.einsum('bhqk,bhkd->bhqd', p_attn, value)
    att = att.transpose(0, 2, 1, 3).reshape(B, R)

    ctx = jnp.concatenate([att, h_att], axis=-1) @ raw['wctx'].T + raw['bctx']
    output = ctx[:, :R] * jax.nn.sigmoid(ctx[:, R:])
    return output, jnp.stack([h_att, output]), jnp.stack([c_att, c1])


if __name__ == "__main__":
    root = jax.random.PRNGKey(0)
    k_in, k_par = jax.random.split(root)
    ks = jax.random.split(k_in, 5)
    T = 4
    xt_seq = jax.random.normal(ks[0], (T, B, E), jnp.float32)
    mean_feats = jax.random.normal(ks[1], (B, R), jnp.float32)
    p_att_feats = jax.random.normal(ks[2], (B, L, 2 * R), jnp.float32)
    h_prev = jax.random.normal(ks[3], (2, B, R), jnp.float32)
    c_prev = jax.random.normal(ks[4], (2, B, R), jnp.float32)

    raw = init_raw_params(k_par)
    params = pack_params(raw)

    # ---- single-step (module-equivalent) call ----
    out, (h_new, c_new) = aoa_decoder_core(
        xt_seq[0], mean_feats, p_att_feats, (h_prev, c_prev), params)
    jax.block_until_ready((out, h_new, c_new))

    ref_out, ref_h, ref_c = reference(xt_seq[0], mean_feats, p_att_feats, h_prev, c_prev, raw)
    assert out.shape == (B, R) and h_new.shape == (2, B, R) and c_new.shape == (2, B, R)
    # Tolerances cover bf16 weights + (on v6e/v7x) bf16 attention elementwise/exp.
    assert np.allclose(np.asarray(out), np.asarray(ref_out), atol=3e-2, rtol=3e-2)
    assert np.allclose(np.asarray(h_new), np.asarray(ref_h), atol=3e-2, rtol=3e-2)
    assert np.allclose(np.asarray(c_new), np.asarray(ref_c), atol=3e-2, rtol=3e-2)

    # ---- multi-step decode: T steps inside one kernel invocation ----
    out_seq, (h_T, c_T) = aoa_decoder_core_seq(
        xt_seq, mean_feats, p_att_feats, (h_prev, c_prev), params)
    jax.block_until_ready((out_seq, h_T, c_T))

    rh, rc = h_prev, c_prev
    ref_outs = []
    for t in range(T):
        o, rh, rc = reference(xt_seq[t], mean_feats, p_att_feats, rh, rc, raw)
        ref_outs.append(o)
    ref_seq = jnp.stack(ref_outs)
    # Looser tolerance: bf16 rounding accumulates across T steps.
    assert np.allclose(np.asarray(out_seq), np.asarray(ref_seq), atol=6e-2, rtol=6e-2)
    assert np.allclose(np.asarray(h_T), np.asarray(rh), atol=6e-2, rtol=6e-2)
    assert np.allclose(np.asarray(c_T), np.asarray(rc), atol=6e-2, rtol=6e-2)

    print("KERNEL_OK")
</pallas_src>

<mosaic_0001>
module attributes {stable_mosaic.version = 11 : i64} {
  func.func @aoa_decoder_core_kernel(%arg0: i32, %arg1: memref<1x8x128xf32, #tpu.memory_space<vmem>>, %arg2: memref<8x128xf32, #tpu.memory_space<vmem>>, %arg3: memref<8x16x128xf32, #tpu.memory_space<vmem>>, %arg4: memref<8x16x128xf32, #tpu.memory_space<vmem>>, %arg5: memref<2x8x128xf32, #tpu.memory_space<vmem>>, %arg6: memref<2x8x128xf32, #tpu.memory_space<vmem>>, %arg7: memref<384x512xbf16, #tpu.memory_space<vmem>>, %arg8: memref<1x512xf32, #tpu.memory_space<vmem>>, %arg9: memref<1x128xf32, #tpu.memory_space<vmem>>, %arg10: memref<1x128xf32, #tpu.memory_space<vmem>>, %arg11: memref<128x128xbf16, #tpu.memory_space<vmem>>, %arg12: memref<1x128xf32, #tpu.memory_space<vmem>>, %arg13: memref<256x256xbf16, #tpu.memory_space<vmem>>, %arg14: memref<1x256xf32, #tpu.memory_space<vmem>>, %arg15: memref<128x128xbf16, #tpu.memory_space<vmem>>, %arg16: memref<1x8x128xf32, #tpu.memory_space<vmem>>, %arg17: memref<2x8x128xf32, #tpu.memory_space<vmem>>, %arg18: memref<2x8x128xf32, #tpu.memory_space<vmem>>) attributes {dimension_semantics = [#tpu.dimension_semantics<parallel>], iteration_bounds = array<i64: 1>, scalar_prefetch = 0 : i64, scratch_operands = 0 : i64, tpu.core_type = #tpu.core_type<tc>, window_params = [{transform_indices = @transform_0, window_bounds = array<i64: 1, 8, 128>}, {transform_indices = @transform_1, window_bounds = array<i64: 8, 128>}, {transform_indices = @transform_2, window_bounds = array<i64: 8, 16, 128>}, {transform_indices = @transform_3, window_bounds = array<i64: 8, 16, 128>}, {transform_indices = @transform_4, window_bounds = array<i64: 2, 8, 128>}, {transform_indices = @transform_5, window_bounds = array<i64: 2, 8, 128>}, {pipeline_mode = #tpu.pipeline_mode<synchronous>, transform_indices = @transform_6, window_bounds = array<i64: 384, 512>}, {pipeline_mode = #tpu.pipeline_mode<synchronous>, transform_indices = @transform_7, window_bounds = array<i64: 1, 512>}, {pipeline_mode = #tpu.pipeline_mode<synchronous>, transform_indices = @transform_8, window_bounds = array<i64: 1, 128>}, {pipeline_mode = #tpu.pipeline_mode<synchronous>, transform_indices = @transform_9, window_bounds = array<i64: 1, 128>}, {pipeline_mode = #tpu.pipeline_mode<synchronous>, transform_indices = @transform_10, window_bounds = array<i64: 128, 128>}, {pipeline_mode = #tpu.pipeline_mode<synchronous>, transform_indices = @transform_11, window_bounds = array<i64: 1, 128>}, {pipeline_mode = #tpu.pipeline_mode<synchronous>, transform_indices = @transform_12, window_bounds = array<i64: 256, 256>}, {pipeline_mode = #tpu.pipeline_mode<synchronous>, transform_indices = @transform_13, window_bounds = array<i64: 1, 256>}, {pipeline_mode = #tpu.pipeline_mode<synchronous>, transform_indices = @transform_14, window_bounds = array<i64: 128, 128>}, {transform_indices = @transform_15, window_bounds = array<i64: 1, 8, 128>}, {transform_indices = @transform_16, window_bounds = array<i64: 2, 8, 128>}, {transform_indices = @transform_17, window_bounds = array<i64: 2, 8, 128>}]} {
    %c0 = arith.constant 0 : index
    %c0_0 = arith.constant 0 : index
    %0 = vector.load %arg2[%c0, %c0_0] : memref<8x128xf32, #tpu.memory_space<vmem>>, vector<8x128xf32>
    %c0_1 = arith.constant 0 : index
    %c0_2 = arith.constant 0 : index
    %c0_3 = arith.constant 0 : index
    %1 = vector.load %arg3[%c0_1, %c0_2, %c0_3] : memref<8x16x128xf32, #tpu.memory_space<vmem>>, vector<8x16x128xf32>
    %c0_4 = arith.constant 0 : index
    %c0_5 = arith.constant 0 : index
    %c0_6 = arith.constant 0 : index
    %2 = vector.load %arg4[%c0_4, %c0_5, %c0_6] : memref<8x16x128xf32, #tpu.memory_space<vmem>>, vector<8x16x128xf32>
    %c0_7 = arith.constant 0 : index
    %c0_8 = arith.constant 0 : index
    %3 = vector.load %arg8[%c0_7, %c0_8] : memref<1x512xf32, #tpu.memory_space<vmem>>, vector<1x512xf32>
    %4 = vector.shape_cast %3 : vector<1x512xf32> to vector<1x512xf32>
    %5 = vector.broadcast %4 : vector<1x512xf32> to vector<8x512xf32>
    %c0_9 = arith.constant 0 : index
    %c0_10 = arith.constant 0 : index
    %6 = vector.load %arg9[%c0_9, %c0_10] : memref<1x128xf32, #tpu.memory_space<vmem>>, vector<1x128xf32>
    %7 = vector.shape_cast %6 : vector<1x128xf32> to vector<1x128xf32>
    %8 = vector.broadcast %7 : vector<1x128xf32> to vector<8x128xf32>
    %c0_11 = arith.constant 0 : index
    %c0_12 = arith.constant 0 : index
    %9 = vector.load %arg10[%c0_11, %c0_12] : memref<1x128xf32, #tpu.memory_space<vmem>>, vector<1x128xf32>
    %10 = vector.shape_cast %9 : vector<1x128xf32> to vector<1x128xf32>
    %11 = vector.broadcast %10 : vector<1x128xf32> to vector<8x128xf32>
    %c0_13 = arith.constant 0 : index
    %c0_14 = arith.constant 0 : index
    %12 = vector.load %arg12[%c0_13, %c0_14] : memref<1x128xf32, #tpu.memory_space<vmem>>, vector<1x128xf32>
    %13 = vector.shape_cast %12 : vector<1x128xf32> to vector<1x128xf32>
    %14 = vector.broadcast %13 : vector<1x128xf32> to vector<8x128xf32>
    %c0_15 = arith.constant 0 : index
    %c0_16 = arith.constant 0 : index
    %15 = vector.load %arg14[%c0_15, %c0_16] : memref<1x256xf32, #tpu.memory_space<vmem>>, vector<1x256xf32>
    %16 = vector.shape_cast %15 : vector<1x256xf32> to vector<1x256xf32>
    %17 = vector.broadcast %16 : vector<1x256xf32> to vector<8x256xf32>
    %c0_17 = arith.constant 0 : index
    %c0_18 = arith.constant 0 : index
    %c0_19 = arith.constant 0 : index
    %18 = vector.load %arg5[%c0_17, %c0_18, %c0_19] : memref<2x8x128xf32, #tpu.memory_space<vmem>>, vector<1x8x128xf32>
    %19 = vector.shape_cast %18 : vector<1x8x128xf32> to vector<8x128xf32>
    %c1 = arith.constant 1 : index
    %c0_20 = arith.constant 0 : index
    %c0_21 = arith.constant 0 : index
    %20 = vector.load %arg5[%c1, %c0_20, %c0_21] : memref<2x8x128xf32, #tpu.memory_space<vmem>>, vector<1x8x128xf32>
    %21 = vector.shape_cast %20 : vector<1x8x128xf32> to vector<8x128xf32>
    %c0_22 = arith.constant 0 : index
    %c0_23 = arith.constant 0 : index
    %c0_24 = arith.constant 0 : index
    %22 = vector.load %arg6[%c0_22, %c0_23, %c0_24] : memref<2x8x128xf32, #tpu.memory_space<vmem>>, vector<1x8x128xf32>
    %23 = vector.shape_cast %22 : vector<1x8x128xf32> to vector<8x128xf32>
    %c0_i32 = arith.constant 0 : i32
    %24 = arith.index_cast %c0_i32 : i32 to index
    %c0_25 = arith.constant 0 : index
    %c0_26 = arith.constant 0 : index
    %25 = vector.load %arg1[%24, %c0_25, %c0_26] : memref<1x8x128xf32, #tpu.memory_space<vmem>>, vector<1x8x128xf32>
    %26 = vector.shape_cast %25 : vector<1x8x128xf32> to vector<8x128xf32>
    %27 = arith.addf %0, %21 : vector<8x128xf32>
    %28 = tpu.concatenate %26, %27, %19 in 1 : vector<8x128xf32>, vector<8x128xf32>, vector<8x128xf32> -> vector<8x384xf32>
    %29 = arith.truncf %28 : vector<8x384xf32> to vector<8x384xbf16>
    %c0_27 = arith.constant 0 : index
    %c0_28 = arith.constant 0 : index
    %30 = vector.load %arg7[%c0_27, %c0_28] : memref<384x512xbf16, #tpu.memory_space<vmem>>, vector<384x512xbf16>
    %cst = arith.constant dense<0.000000e+00> : vector<8x512xf32>
    %31 = tpu.matmul %29, %30, %cst {dimension_numbers = #tpu.dot_dimension_numbers<[1], [0], [0], [1], [0, 0, 1, 1], [], []>} : vector<8x384xbf16>, vector<384x512xbf16>, vector<8x512xf32> -> vector<8x512xf32>
    %32 = arith.addf %31, %5 : vector<8x512xf32>
    %33 = vector.extract_strided_slice %32 {offsets = [0, 0], sizes = [8, 384], strides = [1, 1]} : vector<8x512xf32> to vector<8x384xf32>
    %34 = arith.negf %33 : vector<8x384xf32>
    %35 = math.exp %34 : vector<8x384xf32>
    %cst_29 = arith.constant 1.000000e+00 : f32
    %36 = vector.broadcast %cst_29 : f32 to vector<8x384xf32>
    %37 = arith.addf %36, %35 : vector<8x384xf32>
    %38 = arith.divf %36, %37 : vector<8x384xf32>
    %39 = vector.extract_strided_slice %38 {offsets = [0, 0], sizes = [8, 128], strides = [1, 1]} : vector<8x384xf32> to vector<8x128xf32>
    %40 = vector.extract_strided_slice %38 {offsets = [0, 128], sizes = [8, 128], strides = [1, 1]} : vector<8x384xf32> to vector<8x128xf32>
    %41 = vector.extract_strided_slice %38 {offsets = [0, 256], sizes = [8, 128], strides = [1, 1]} : vector<8x384xf32> to vector<8x128xf32>
    %42 = vector.extract_strided_slice %32 {offsets = [0, 384], sizes = [8, 128], strides = [1, 1]} : vector<8x512xf32> to vector<8x128xf32>
    %43 = math.tanh %42 : vector<8x128xf32>
    %44 = arith.mulf %40, %23 : vector<8x128xf32>
    %45 = arith.mulf %39, %43 : vector<8x128xf32>
    %46 = arith.addf %44, %45 : vector<8x128xf32>
    %47 = math.tanh %46 : vector<8x128xf32>
    %48 = arith.mulf %41, %47 : vector<8x128xf32>
    %cst_30 = arith.constant dense<0.000000e+00> : vector<8xf32>
    %49 = vector.multi_reduction <add>, %48, %cst_30 [1] : vector<8x128xf32> to vector<8xf32>
    %50 = vector.shape_cast %49 : vector<8xf32> to vector<8x1xf32>
    %cst_31 = arith.constant 1.280000e+02 : f32
    %51 = vector.broadcast %cst_31 : f32 to vector<8x1xf32>
    %52 = arith.divf %50, %51 : vector<8x1xf32>
    %53 = vector.broadcast %52 : vector<8x1xf32> to vector<8x128xf32>
    %54 = arith.subf %48, %53 : vector<8x128xf32>
    %55 = arith.mulf %54, %54 : vector<8x128xf32>
    %cst_32 = arith.constant dense<0.000000e+00> : vector<8xf32>
    %56 = vector.multi_reduction <add>, %55, %cst_32 [1] : vector<8x128xf32> to vector<8xf32>
    %57 = vector.shape_cast %56 : vector<8xf32> to vector<8x1xf32>
    %cst_33 = arith.constant 0.00787401571 : f32
    %58 = vector.broadcast %cst_33 : f32 to vector<8x1xf32>
    %59 = arith.mulf %57, %58 : vector<8x1xf32>
    %60 = math.sqrt %59 : vector<8x1xf32>
    %61 = arith.mulf %8, %54 : vector<8x128xf32>
    %cst_34 = arith.constant 9.99999997E-7 : f32
    %62 = vector.broadcast %cst_34 : f32 to vector<8x1xf32>
    %63 = arith.addf %60, %62 : vector<8x1xf32>
    %64 = tpu.reciprocal %63 {approx = true} : vector<8x1xf32> -> vector<8x1xf32>
    %65 = vector.broadcast %64 : vector<8x1xf32> to vector<8x128xf32>
    %66 = arith.mulf %61, %65 : vector<8x128xf32>
    %67 = arith.addf %66, %11 : vector<8x128xf32>
    %68 = arith.truncf %67 : vector<8x128xf32> to vector<8x128xbf16>
    %c0_35 = arith.constant 0 : index
    %c0_36 = arith.constant 0 : index
    %69 = vector.load %arg11[%c0_35, %c0_36] : memref<128x128xbf16, #tpu.memory_space<vmem>>, vector<128x128xbf16>
    %cst_37 = arith.constant dense<0.000000e+00> : vector<8x128xf32>
    %70 = tpu.matmul %68, %69, %cst_37 {dimension_numbers = #tpu.dot_dimension_numbers<[1], [0], [0], [1], [0, 0, 1, 1], [], []>} : vector<8x128xbf16>, vector<128x128xbf16>, vector<8x128xf32> -> vector<8x128xf32>
    %71 = arith.addf %70, %14 : vector<8x128xf32>
    %72 = vector.shape_cast %71 : vector<8x128xf32> to vector<8x1x128xf32>
    %73 = vector.broadcast %72 : vector<8x1x128xf32> to vector<8x16x128xf32>
    %74 = arith.mulf %2, %73 : vector<8x16x128xf32>
    %75 = vector.shape_cast %74 : vector<8x16x128xf32> to vector<128x128xf32>
    %76 = arith.truncf %75 : vector<128x128xf32> to vector<128x128xbf16>
    %c0_38 = arith.constant 0 : index
    %c0_39 = arith.constant 0 : index
    %77 = vector.load %arg15[%c0_38, %c0_39] : memref<128x128xbf16, #tpu.memory_space<vmem>>, vector<128x128xbf16>
    %cst_40 = arith.constant dense<0.000000e+00> : vector<128x128xf32>
    %78 = tpu.matmul %76, %77, %cst_40 {dimension_numbers = #tpu.dot_dimension_numbers<[1], [0], [0], [1], [0, 0, 1, 1], [], []>} : vector<128x128xbf16>, vector<128x128xbf16>, vector<128x128xf32> -> vector<128x128xf32>
    %79 = vector.shape_cast %78 : vector<128x128xf32> to vector<8x16x128xf32>
    %cst_41 = arith.constant dense<0xFF800000> : vector<8x128xf32>
    %80 = vector.multi_reduction <maximumf>, %79, %cst_41 [1] : vector<8x16x128xf32> to vector<8x128xf32>
    %81 = vector.shape_cast %80 : vector<8x128xf32> to vector<8x1x128xf32>
    %82 = vector.broadcast %81 : vector<8x1x128xf32> to vector<8x16x128xf32>
    %83 = arith.subf %79, %82 : vector<8x16x128xf32>
    %84 = math.exp %83 : vector<8x16x128xf32>
    %cst_42 = arith.constant dense<0.000000e+00> : vector<8x128xf32>
    %85 = vector.multi_reduction <add>, %84, %cst_42 [1] : vector<8x16x128xf32> to vector<8x128xf32>
    %86 = arith.mulf %84, %1 : vector<8x16x128xf32>
    %cst_43 = arith.constant dense<0.000000e+00> : vector<8x128xf32>
    %87 = vector.multi_reduction <add>, %86, %cst_43 [1] : vector<8x16x128xf32> to vector<8x128xf32>
    %88 = arith.divf %87, %85 : vector<8x128xf32>
    %89 = arith.truncf %88 : vector<8x128xf32> to vector<8x128xbf16>
    %90 = arith.truncf %48 : vector<8x128xf32> to vector<8x128xbf16>
    %91 = tpu.concatenate %89, %90 in 1 : vector<8x128xbf16>, vector<8x128xbf16> -> vector<8x256xbf16>
    %c0_44 = arith.constant 0 : index
    %c0_45 = arith.constant 0 : index
    %92 = vector.load %arg13[%c0_44, %c0_45] : memref<256x256xbf16, #tpu.memory_space<vmem>>, vector<256x256xbf16>
    %cst_46 = arith.constant dense<0.000000e+00> : vector<8x256xf32>
    %93 = tpu.matmul %91, %92, %cst_46 {dimension_numbers = #tpu.dot_dimension_numbers<[1], [0], [0], [1], [0, 0, 1, 1], [], []>} : vector<8x256xbf16>, vector<256x256xbf16>, vector<8x256xf32> -> vector<8x256xf32>
    %94 = arith.addf %93, %17 : vector<8x256xf32>
    %95 = vector.extract_strided_slice %94 {offsets = [0, 0], sizes = [8, 128], strides = [1, 1]} : vector<8x256xf32> to vector<8x128xf32>
    %96 = vector.extract_strided_slice %94 {offsets = [0, 128], sizes = [8, 128], strides = [1, 1]} : vector<8x256xf32> to vector<8x128xf32>
    %97 = arith.negf %96 : vector<8x128xf32>
    %98 = math.exp %97 : vector<8x128xf32>
    %cst_47 = arith.constant 1.000000e+00 : f32
    %99 = vector.broadcast %cst_47 : f32 to vector<8x128xf32>
    %100 = arith.addf %99, %98 : vector<8x128xf32>
    %101 = arith.divf %99, %100 : vector<8x128xf32>
    %102 = arith.mulf %95, %101 : vector<8x128xf32>
    %103 = arith.index_cast %c0_i32 : i32 to index
    %c0_48 = arith.constant 0 : index
    %c0_49 = arith.constant 0 : index
    %104 = vector.load %arg16[%103, %c0_48, %c0_49] : memref<1x8x128xf32, #tpu.memory_space<vmem>>, vector<1x8x128xf32>
    %105 = vector.shape_cast %104 : vector<1x8x128xf32> to vector<8x128xf32>
    %106 = vector.shape_cast %102 : vector<8x128xf32> to vector<1x8x128xf32>
    tpu.vector_store %arg16[%103, %c0_48, %c0_49], %106 {strides = array<i32>} : memref<1x8x128xf32, #tpu.memory_space<vmem>>, vector<1x8x128xf32>,
    %c1_i32 = arith.constant 1 : i32
    %c0_50 = arith.constant 0 : index
    %c0_51 = arith.constant 0 : index
    %c0_52 = arith.constant 0 : index
    %107 = vector.load %arg17[%c0_50, %c0_51, %c0_52] : memref<2x8x128xf32, #tpu.memory_space<vmem>>, vector<1x8x128xf32>
    %108 = vector.shape_cast %107 : vector<1x8x128xf32> to vector<8x128xf32>
    %109 = vector.shape_cast %48 : vector<8x128xf32> to vector<1x8x128xf32>
    tpu.vector_store %arg17[%c0_50, %c0_51, %c0_52], %109 {strides = array<i32>} : memref<2x8x128xf32, #tpu.memory_space<vmem>>, vector<1x8x128xf32>,
    %c1_53 = arith.constant 1 : index
    %c0_54 = arith.constant 0 : index
    %c0_55 = arith.constant 0 : index
    %110 = vector.load %arg17[%c1_53, %c0_54, %c0_55] : memref<2x8x128xf32, #tpu.memory_space<vmem>>, vector<1x8x128xf32>
    %111 = vector.shape_cast %110 : vector<1x8x128xf32> to vector<8x128xf32>
    %112 = vector.shape_cast %102 : vector<8x128xf32> to vector<1x8x128xf32>
    tpu.vector_store %arg17[%c1_53, %c0_54, %c0_55], %112 {strides = array<i32>} : memref<2x8x128xf32, #tpu.memory_space<vmem>>, vector<1x8x128xf32>,
    %c0_56 = arith.constant 0 : index
    %c0_57 = arith.constant 0 : index
    %c0_58 = arith.constant 0 : index
    %113 = vector.load %arg18[%c0_56, %c0_57, %c0_58] : memref<2x8x128xf32, #tpu.memory_space<vmem>>, vector<1x8x128xf32>
    %114 = vector.shape_cast %113 : vector<1x8x128xf32> to vector<8x128xf32>
    %115 = vector.shape_cast %46 : vector<8x128xf32> to vector<1x8x128xf32>
    tpu.vector_store %arg18[%c0_56, %c0_57, %c0_58], %115 {strides = array<i32>} : memref<2x8x128xf32, #tpu.memory_space<vmem>>, vector<1x8x128xf32>,
    %c1_59 = arith.constant 1 : index
    %c0_60 = arith.constant 0 : index
    %c0_61 = arith.constant 0 : index
    %116 = vector.load %arg6[%c1_59, %c0_60, %c0_61] : memref<2x8x128xf32, #tpu.memory_space<vmem>>, vector<1x8x128xf32>
    %117 = vector.shape_cast %116 : vector<1x8x128xf32> to vector<8x128xf32>
    %c1_62 = arith.constant 1 : index
    %c0_63 = arith.constant 0 : index
    %c0_64 = arith.constant 0 : index
    %118 = vector.load %arg18[%c1_62, %c0_63, %c0_64] : memref<2x8x128xf32, #tpu.memory_space<vmem>>, vector<1x8x128xf32>
    %119 = vector.shape_cast %118 : vector<1x8x128xf32> to vector<8x128xf32>
    %120 = vector.shape_cast %117 : vector<8x128xf32> to vector<1x8x128xf32>
    tpu.vector_store %arg18[%c1_62, %c0_63, %c0_64], %120 {strides = array<i32>} : memref<2x8x128xf32, #tpu.memory_space<vmem>>, vector<1x8x128xf32>,
    return
  }
  func.func @transform_0(%arg0: i32) -> (i32, i32, i32) {
    %c0_i32 = arith.constant 0 : i32
    %c0_i32_0 = arith.constant 0 : i32
    %c0_i32_1 = arith.constant 0 : i32
    return %c0_i32, %arg0, %c0_i32_0 : i32, i32, i32
  }
  func.func @transform_1(%arg0: i32) -> (i32, i32) {
    %c0_i32 = arith.constant 0 : i32
    %c0_i32_0 = arith.constant 0 : i32
    return %arg0, %c0_i32 : i32, i32
  }
  func.func @transform_2(%arg0: i32) -> (i32, i32, i32) {
    %c0_i32 = arith.constant 0 : i32
    %c0_i32_0 = arith.constant 0 : i32
    %c0_i32_1 = arith.constant 0 : i32
    return %arg0, %c0_i32, %c0_i32_0 : i32, i32, i32
  }
  func.func @transform_3(%arg0: i32) -> (i32, i32, i32) {
    %c0_i32 = arith.constant 0 : i32
    %c0_i32_0 = arith.constant 0 : i32
    %c0_i32_1 = arith.constant 0 : i32
    return %arg0, %c0_i32, %c0_i32_0 : i32, i32, i32
  }
  func.func @transform_4(%arg0: i32) -> (i32, i32, i32) {
    %c0_i32 = arith.constant 0 : i32
    %c0_i32_0 = arith.constant 0 : i32
    %c0_i32_1 = arith.constant 0 : i32
    return %c0_i32, %arg0, %c0_i32_0 : i32, i32, i32
  }
  func.func @transform_5(%arg0: i32) -> (i32, i32, i32) {
    %c0_i32 = arith.constant 0 : i32
    %c0_i32_0 = arith.constant 0 : i32
    %c0_i32_1 = arith.constant 0 : i32
    return %c0_i32, %arg0, %c0_i32_0 : i32, i32, i32
  }
  func.func @transform_6(%arg0: i32) -> (i32, i32) {
    %c0_i32 = arith.constant 0 : i32
    %c0_i32_0 = arith.constant 0 : i32
    %c0_i32_1 = arith.constant 0 : i32
    return %c0_i32, %c0_i32_0 : i32, i32
  }
  func.func @transform_7(%arg0: i32) -> (i32, i32) {
    %c0_i32 = arith.constant 0 : i32
    %c0_i32_0 = arith.constant 0 : i32
    %c0_i32_1 = arith.constant 0 : i32
    return %c0_i32, %c0_i32_0 : i32, i32
  }
  func.func @transform_8(%arg0: i32) -> (i32, i32) {
    %c0_i32 = arith.constant 0 : i32
    %c0_i32_0 = arith.constant 0 : i32
    %c0_i32_1 = arith.constant 0 : i32
    return %c0_i32, %c0_i32_0 : i32, i32
  }
  func.func @transform_9(%arg0: i32) -> (i32, i32) {
    %c0_i32 = arith.constant 0 : i32
    %c0_i32_0 = arith.constant 0 : i32
    %c0_i32_1 = arith.constant 0 : i32
    return %c0_i32, %c0_i32_0 : i32, i32
  }
  func.func @transform_10(%arg0: i32) -> (i32, i32) {
    %c0_i32 = arith.constant 0 : i32
    %c0_i32_0 = arith.constant 0 : i32
    %c0_i32_1 = arith.constant 0 : i32
    return %c0_i32, %c0_i32_0 : i32, i32
  }
  func.func @transform_11(%arg0: i32) -> (i32, i32) {
    %c0_i32 = arith.constant 0 : i32
    %c0_i32_0 = arith.constant 0 : i32
    %c0_i32_1 = arith.constant 0 : i32
    return %c0_i32, %c0_i32_0 : i32, i32
  }
  func.func @transform_12(%arg0: i32) -> (i32, i32) {
    %c0_i32 = arith.constant 0 : i32
    %c0_i32_0 = arith.constant 0 : i32
    %c0_i32_1 = arith.constant 0 : i32
    return %c0_i32, %c0_i32_0 : i32, i32
  }
  func.func @transform_13(%arg0: i32) -> (i32, i32) {
    %c0_i32 = arith.constant 0 : i32
    %c0_i32_0 = arith.constant 0 : i32
    %c0_i32_1 = arith.constant 0 : i32
    return %c0_i32, %c0_i32_0 : i32, i32
  }
  func.func @transform_14(%arg0: i32) -> (i32, i32) {
    %c0_i32 = arith.constant 0 : i32
    %c0_i32_0 = arith.constant 0 : i32
    %c0_i32_1 = arith.constant 0 : i32
    return %c0_i32, %c0_i32_0 : i32, i32
  }
  func.func @transform_15(%arg0: i32) -> (i32, i32, i32) {
    %c0_i32 = arith.constant 0 : i32
    %c0_i32_0 = arith.constant 0 : i32
    %c0_i32_1 = arith.constant 0 : i32
    return %c0_i32, %arg0, %c0_i32_0 : i32, i32, i32
  }
  func.func @transform_16(%arg0: i32) -> (i32, i32, i32) {
    %c0_i32 = arith.constant 0 : i32
    %c0_i32_0 = arith.constant 0 : i32
    %c0_i32_1 = arith.constant 0 : i32
    return %c0_i32, %arg0, %c0_i32_0 : i32, i32, i32
  }
  func.func @transform_17(%arg0: i32) -> (i32, i32, i32) {
    %c0_i32 = arith.constant 0 : i32
    %c0_i32_0 = arith.constant 0 : i32
    %c0_i32_1 = arith.constant 0 : i32
    return %c0_i32, %arg0, %c0_i32_0 : i32, i32, i32
  }
}

</mosaic_0001>

<bundles_post_ra>
// kernel: aoa_decoder_core_seq.1
= control target key start
LH: loop header
LB: loop body
LE: loop exit
PB: predicated region body
PF: predicated region fallthrough
CT: control target
= control target key end

     0   :  { %s3158_s0 = inlined_call_operand.vmem [shape: f32[1,8,128], index: 0, kind: input, shape index: {}]   ;;  %s3159_s1 = inlined_call_operand.vmem [shape: f32[8,128], index: 1, kind: input, shape index: {}]   ;;  %s3160_s2 = inlined_call_operand.vmem [shape: f32[8,16,128], index: 2, kind: input, shape index: {}]   ;;  %s3161_s3 = inlined_call_operand.vmem [shape: f32[8,16,128], index: 3, kind: input, shape index: {}]   ;;  %s3162_s4 = inlined_call_operand.hbm [shape: f32[2,8,128], index: 4, kind: input, shape index: {}, may-alias: {4,16}]   ;;  %s3163_s5 = inlined_call_operand.hbm [shape: f32[2,8,128], index: 5, kind: input, shape index: {}, may-alias: {5,17}]   ;;  %s3164_s6 = inlined_call_operand.hbm [shape: bf16[384,512], index: 6, kind: input, shape index: {}]   ;;  %s3165_s7 = inlined_call_operand.vmem [shape: f32[1,512], index: 7, kind: input, shape index: {}]   ;;  %s3166_s8 = inlined_call_operand.vmem [shape: f32[1,128], index: 8, kind: input, shape index: {}]   ;;  %s3167_s9 = inlined_call_operand.vmem [shape: f32[1,128], index: 9, kind: input, shape index: {}]   ;;  %s3168_s10 = inlined_call_operand.vmem [shape: bf16[128,128], index: 10, kind: input, shape index: {}]   ;;  %s3169_s11 = inlined_call_operand.vmem [shape: f32[1,128], index: 11, kind: input, shape index: {}]   ;;  %s3170_s12 = inlined_call_operand.vmem [shape: bf16[256,256], index: 12, kind: input, shape index: {}]   ;;  %s3171_s13 = inlined_call_operand.vmem [shape: f32[1,256], index: 13, kind: input, shape index: {}]   ;;  %s3172_s14 = inlined_call_operand.vmem [shape: bf16[128,128], index: 14, kind: input, shape index: {}]   ;;  %s3173_s15 = inlined_call_operand.hbm [shape: f32[1,8,128], index: 15, kind: output, shape index: {0}]   ;;  %s3174_s16 = inlined_call_operand.hbm [shape: f32[2,8,128], index: 16, kind: output, shape index: {1}, may-alias: {4,16}]   ;;  %s3175_s17 = inlined_call_operand.hbm [shape: f32[2,8,128], index: 17, kind: output, shape index: {2}, may-alias: {5,17}]  }
   0x1   :  { %3176 = sst [smem:[#allocation16_spill]] %s3158_s0 }
   0x2   :  { %3177 = sst [smem:[#allocation17_spill]] %s3159_s1 }
   0x3   :  { %23 = vsyncpa [#allocation3], 0 }
   0x4   :  { %24 = vsyncpa [#allocation6], 0 }
   0x5   :  { %25 = vsyncpa [#allocation4], 0 }
   0x6   :  { %26 = vsyncpa [#allocation10], 0  ;;  %s2616_s24 = smov [#allocation5]   ;;  %s2617_s26 = smov [#allocation2]  }
   0x7   :  { %s52_s25 = sshll.u32 %s2616_s24, 4  ;;  %s40_s27 = sshll.u32 %s2617_s26, 4  ;;  %s53_s25 = int_to_ptr.vmem [resolvable:$true] %s52_s25  ;;  %s2720_s27 = int_to_ptr.vmem [resolvable:$true] %s40_s27 }
   0x8   :  { %s2476_s0 = scalar_lea.hbm %s3163_s5, 256 }
   0x9   :  { %p2477_p0 = scmp.ne.s32.totalorder %s3163_s5, %s2476_s0  ;;  %p2480_p1 = scmp.lt.u32.totalorder %s2476_s0, %s3163_s5 }
   0xb   :  { %p2482_p2 = pnand %p2480_p1, %p2477_p0 }
   0xd   :  { %2485 = shalt.err (!%p2482_p2)
}
   0xe   :  { %s2486_s20 = scalar_lea.vmem %s53_s25, 256  ;;  %p2491_p4 = scmp.lt.s32.totalorder %s53_s25, %s53_s25 }
   0xf   :  { %p2487_p3 = scmp.ne.s32.totalorder %s53_s25, %s2486_s20  ;;  %p2492_p5 = scmp.lt.s32.totalorder %s2486_s20, %s2486_s20 }
  0x11   :  { %p2493_p6 = por %p2492_p5, %p2491_p4 }
  0x13   :  { %p2494_p7 = pnand %p2493_p6, %p2487_p3 }
  0x15   :  { %2497 = shalt.err (!%p2494_p7)
}
  0x16   :  { %s2618_s21 = smov 128   ;;  %s2619_s22 = smov 8  }
  0x17   :  { %58 = dma.hbm_to_vmem [thread:$0]  %s3163_s5, 256, %s53_s25, [#allocation6], %s2618_s21, %s2618_s21, %s2619_s22  }
  0x18   :  { %s2498_s29 = scalar_lea.hbm %s3162_s4, 256 }
  0x19   :  { %p2499_p8 = scmp.ne.s32.totalorder %s3162_s4, %s2498_s29  ;;  %p2502_p9 = scmp.lt.u32.totalorder %s2498_s29, %s3162_s4 }
  0x1b   :  { %p2504_p10 = pnand %p2502_p9, %p2499_p8 }
  0x1d   :  { %2507 = shalt.err (!%p2504_p10)
}
  0x1e   :  { %s2508_s1 = scalar_lea.vmem %s2720_s27, 256  ;;  %p2513_p12 = scmp.lt.s32.totalorder %s2720_s27, %s2720_s27 }
  0x1f   :  { %p2509_p11 = scmp.ne.s32.totalorder %s2720_s27, %s2508_s1  ;;  %p2514_p13 = scmp.lt.s32.totalorder %s2508_s1, %s2508_s1 }
  0x21   :  { %p2515_p0 = por %p2514_p13, %p2513_p12 }
  0x23   :  { %p2516_p1 = pnand %p2515_p0, %p2509_p11 }
  0x25   :  { %2519 = shalt.err (!%p2516_p1)
}
  0x26   :  { %46 = dma.hbm_to_vmem [thread:$0]  %s3162_s4, 256, %s2720_s27, [#allocation3], %s2618_s21, %s2618_s21, %s2619_s22  }
  0x27   :  { %s2620_s20 = smov [#allocation7]   ;;  %s2520_s28 = scalar_lea.hbm %s3164_s6, 12288 }
  0x28   :  { %s64_s23 = sshll.u32 %s2620_s20, 4  ;;  %p2521_p2 = scmp.ne.s32.totalorder %s3164_s6, %s2520_s28  ;;  %s65_s23 = int_to_ptr.vmem [resolvable:$true] %s64_s23 }
  0x29   :  { %p2524_p3 = scmp.lt.u32.totalorder %s2520_s28, %s3164_s6 }
  0x2b   :  { %p2526_p4 = pnand %p2524_p3, %p2521_p2 }
  0x2d   :  { %2529 = shalt.err (!%p2526_p4)
}
  0x2e   :  { %s2530_s19 = scalar_lea.vmem %s65_s23, 12288  ;;  %p2535_p6 = scmp.lt.s32.totalorder %s65_s23, %s65_s23 }
  0x2f   :  { %p2531_p5 = scmp.ne.s32.totalorder %s65_s23, %s2530_s19  ;;  %p2536_p7 = scmp.lt.s32.totalorder %s2530_s19, %s2530_s19 }
  0x31   :  { %p2537_p8 = por %p2536_p7, %p2535_p6 }
  0x33   :  { %p2538_p9 = pnand %p2537_p8, %p2531_p5 }
  0x35   :  { %2541 = shalt.err (!%p2538_p9)
}
  0x36   :  { %s2621_s4 = smov 256   ;;  %s2622_s27 = smov 16  }
  0x37   :  { %70 = dma.hbm_to_vmem [thread:$0]  %s3164_s6, 12288, %s65_s23, [#allocation6], %s2621_s4, %s2621_s4, %s2622_s27  }
  0x38   :  { %2608 = dma.done.wait [#allocation3], 256  }
  0x39   :  { %2609 = vsyncadd [#allocation3], 4294967040 }
  0x3a   :  { %2610 = dma.done.wait [#allocation6], 12544  }
  0x3b   :  { %2611 = vsyncadd [#allocation6], 4294954752  ;;  %v2623_v0 = vmov 0   ;;  %v2196_v1 = vld [vmem:[#allocation7 + $0x4] ss:$16 sps:$4 sm:$0xff]   ;;  %s3178_s20 = sld [smem:[#allocation17_spill]] }
  0x3c   :  { %843 = vmatprep.mubr.bf16.mxu1 %v2623_v0  ;;  %v2198_v2 = vld [vmem:[#allocation7 + $0x204] ss:$16 sps:$4 sm:$0xff]   ;;  %770 = vmatprep.subr.bf16.mxu0 %v2196_v1  ;;  %v2200_v3 = vld [vmem:[#allocation7] ss:$16 sps:$4 sm:$0xff]   ;;  %v2248_v35 = vld [vmem:[#allocation7 + $0xc] ss:$16 sps:$4 sm:$0xff]  }
  0x3d   :  { %v2201_v4 = vld [vmem:[#allocation7 + $0x200] ss:$16 sps:$4 sm:$0xff]   ;;  %811 = vmatprep.subr.bf16.mxu1 %v2198_v2  ;;  %v2202_v5 = vld [vmem:[#allocation7 + $0x24] ss:$16 sps:$4 sm:$0xff]   ;;  %771 = vmatpush1.bf16.msra.mxu0 %v2200_v3  ;;  %v2246_v37 = vld [vmem:[#allocation7 + $0x8] ss:$16 sps:$4 sm:$0xff]  }
  0x3e   :  { %812 = vmatpush1.bf16.msra.mxu1 %v2201_v4  ;;  %v2204_v6 = vld [vmem:[#allocation7 + $0x224] ss:$16 sps:$4 sm:$0xff]   ;;  %v2206_v7 = vld [vmem:[#allocation7 + $0x20] ss:$16 sps:$4 sm:$0xff]   ;;  %772 = vmatprep.subr.bf16.mxu0 %v2202_v5  ;;  %v2254_v40 = vld [vmem:[#allocation7 + $0x2c] ss:$16 sps:$4 sm:$0xff]  }
  0x3f   :  { %v2207_v8 = vld [vmem:[#allocation7 + $0x220] ss:$16 sps:$4 sm:$0xff]   ;;  %813 = vmatprep.subr.bf16.mxu1 %v2204_v6  ;;  %v2208_v9 = vld [vmem:[#allocation7 + $0x44] ss:$16 sps:$4 sm:$0xff]   ;;  %v2252_v41 = vld [vmem:[#allocation7 + $0x28] ss:$16 sps:$4 sm:$0xff]  }
  0x40   :  { %v2210_v10 = vld [vmem:[#allocation7 + $0x244] ss:$16 sps:$4 sm:$0xff]   ;;  %v2212_v11 = vld [vmem:[#allocation7 + $0x40] ss:$16 sps:$4 sm:$0xff]   ;;  %v2260_v44 = vld [vmem:[#allocation7 + $0x4c] ss:$16 sps:$4 sm:$0xff]  }
  0x41   :  { %v2213_v12 = vld [vmem:[#allocation7 + $0x240] ss:$16 sps:$4 sm:$0xff]   ;;  %773 = vmatpush1.bf16.msra.mxu0 %v2206_v7  ;;  %v2214_v13 = vld [vmem:[#allocation7 + $0x64] ss:$16 sps:$4 sm:$0xff]   ;;  %v2258_v45 = vld [vmem:[#allocation7 + $0x48] ss:$16 sps:$4 sm:$0xff]  }
  0x42   :  { %814 = vmatpush1.bf16.msra.mxu1 %v2207_v8  ;;  %774 = vmatprep.subr.bf16.mxu0 %v2208_v9  ;;  %v2216_v14 = vld [vmem:[#allocation7 + $0x264] ss:$16 sps:$4 sm:$0xff]   ;;  %v2218_v15 = vld [vmem:[#allocation7 + $0x60] ss:$16 sps:$4 sm:$0xff]   ;;  %v2266_v48 = vld [vmem:[#allocation7 + $0x6c] ss:$16 sps:$4 sm:$0xff]  }
  0x43   :  { %815 = vmatprep.subr.bf16.mxu1 %v2210_v10  ;;  %v2219_v16 = vld [vmem:[#allocation7 + $0x260] ss:$16 sps:$4 sm:$0xff]   ;;  %v2220_v17 = vld [vmem:[#allocation7 + $0x84] ss:$16 sps:$4 sm:$0xff]   ;;  %v2264_v49 = vld [vmem:[#allocation7 + $0x68] ss:$16 sps:$4 sm:$0xff]  }
  0x44   :  { %v2222_v18 = vld [vmem:[#allocation7 + $0x284] ss:$16 sps:$4 sm:$0xff]   ;;  %v2224_v19 = vld [vmem:[#allocation7 + $0x80] ss:$16 sps:$4 sm:$0xff]   ;;  %v187_v52 = vld [vmem:[#allocation2 + $0x8] sm:$0xff]  ;;  %s3179_s26 = sld [smem:[#allocation16_spill]] }
  0x45   :  { %775 = vmatpush1.bf16.msra.mxu0 %v2212_v11  ;;  %v2225_v20 = vld [vmem:[#allocation7 + $0x280] ss:$16 sps:$4 sm:$0xff]   ;;  %v2226_v21 = vld [vmem:[#allocation7 + $0xa4] ss:$16 sps:$4 sm:$0xff]   ;;  %v2272_v55 = vld [vmem:[#allocation7 + $0x8c] ss:$16 sps:$4 sm:$0xff]  }
  0x46   :  { %816 = vmatpush1.bf16.msra.mxu1 %v2213_v12  ;;  %776 = vmatprep.subr.bf16.mxu0 %v2214_v13  ;;  %v2228_v22 = vld [vmem:[#allocation7 + $0x2a4] ss:$16 sps:$4 sm:$0xff]   ;;  %v2230_v23 = vld [vmem:[#allocation7 + $0xa0] ss:$16 sps:$4 sm:$0xff]   ;;  %v2270_v57 = vld [vmem:[#allocation7 + $0x88] ss:$16 sps:$4 sm:$0xff]  }
  0x47   :  { %817 = vmatprep.subr.bf16.mxu1 %v2216_v14  ;;  %v2231_v24 = vld [vmem:[#allocation7 + $0x2a0] ss:$16 sps:$4 sm:$0xff]   ;;  %v2232_v25 = vld [vmem:[#allocation7 + $0xc4] ss:$16 sps:$4 sm:$0xff]   ;;  %v2278_v60 = vld [vmem:[#allocation7 + $0xac] ss:$16 sps:$4 sm:$0xff]  }
  0x48   :  { %v2234_v26 = vld [vmem:[#allocation7 + $0x2c4] ss:$16 sps:$4 sm:$0xff]   ;;  %v2236_v27 = vld [vmem:[#allocation7 + $0xc0] ss:$16 sps:$4 sm:$0xff]   ;;  %v2276_v61 = vld [vmem:[#allocation7 + $0xa8] ss:$16 sps:$4 sm:$0xff]  }
  0x49   :  { %777 = vmatpush1.bf16.msra.mxu0 %v2218_v15  ;;  %v2237_v28 = vld [vmem:[#allocation7 + $0x2c0] ss:$16 sps:$4 sm:$0xff]   ;;  %v2238_v29 = vld [vmem:[#allocation7 + $0xe4] ss:$16 sps:$4 sm:$0xff]   ;;  %v2284_v1 = vld [vmem:[#allocation7 + $0xcc] ss:$16 sps:$4 sm:$0xff]  }
  0x4a   :  { %818 = vmatpush1.bf16.msra.mxu1 %v2219_v16  ;;  %778 = vmatprep.subr.bf16.mxu0 %v2220_v17  ;;  %v2240_v30 = vld [vmem:[#allocation7 + $0x2e4] ss:$16 sps:$4 sm:$0xff]   ;;  %v2242_v31 = vld [vmem:[#allocation7 + $0xe0] ss:$16 sps:$4 sm:$0xff]   ;;  %v2282_v2 = vld [vmem:[#allocation7 + $0xc8] ss:$16 sps:$4 sm:$0xff]  }
  0x4b   :  { %819 = vmatprep.subr.bf16.mxu1 %v2222_v18  ;;  %v2243_v32 = vld [vmem:[#allocation7 + $0x2e0] ss:$16 sps:$4 sm:$0xff]   ;;  %v2244_v34 = vld [vmem:[#allocation7 + $0x104] ss:$16 sps:$4 sm:$0xff]   ;;  %v2290_v5 = vld [vmem:[#allocation7 + $0xec] ss:$16 sps:$4 sm:$0xff]  }
  0x4c   :  { %v185_v33 = vld [vmem:[#allocation2] sm:$0xff]  ;;  %v2288_v6 = vld [vmem:[#allocation7 + $0xe8] ss:$16 sps:$4 sm:$0xff]   ;;  %v2294_v9 = vld [vmem:[#allocation7 + $0x10c] ss:$16 sps:$4 sm:$0xff]   ;;  %vm2625_vm0 = vmmov 0  }
  0x4d   :  { %779 = vmatpush1.bf16.msra.mxu0 %v2224_v19  ;;  %v2770_v36 = vpack.c.bf16 %v185_v33, %v185_v33  ;;  %v2249_v38 = vld [vmem:[#allocation7 + $0x100] ss:$16 sps:$4 sm:$0xff]   ;;  %v2250_v39 = vld [vmem:[#allocation7 + $0x124] ss:$16 sps:$4 sm:$0xff]   ;;  %v2292_v11 = vld [vmem:[#allocation7 + $0x108] ss:$16 sps:$4 sm:$0xff]  }
  0x4e   :  { %820 = vmatpush1.bf16.msra.mxu1 %v2225_v20  ;;  %780 = vmatprep.subr.bf16.mxu0 %v2226_v21  ;;  %v2255_v42 = vld [vmem:[#allocation7 + $0x120] ss:$16 sps:$4 sm:$0xff]   ;;  %v2256_v43 = vld [vmem:[#allocation7 + $0x144] ss:$16 sps:$4 sm:$0xff]   ;;  %v2297_v12 = vld [vmem:[#allocation7 + $0x12c] ss:$16 sps:$4 sm:$0xff]  }
  0x4f   :  { %821 = vmatprep.subr.bf16.mxu1 %v2228_v22  ;;  %v2261_v46 = vld [vmem:[#allocation7 + $0x140] ss:$16 sps:$4 sm:$0xff]   ;;  %v2262_v47 = vld [vmem:[#allocation7 + $0x164] ss:$16 sps:$4 sm:$0xff]   ;;  %v2295_v13 = vld [vmem:[#allocation7 + $0x128] ss:$16 sps:$4 sm:$0xff]  }
  0x50   :  { %v2267_v50 = vld [vmem:[#allocation7 + $0x160] ss:$16 sps:$4 sm:$0xff]   ;;  %v2268_v53 = vld [vmem:[#allocation7 + $0x184] ss:$16 sps:$4 sm:$0xff]   ;;  %v2300_v14 = vld [vmem:[#allocation7 + $0x14c] ss:$16 sps:$4 sm:$0xff]  }
  0x51   :  { %781 = vmatpush1.bf16.msra.mxu0 %v2230_v23  ;;  %v97_v51 = vld [vmem:[%s3178_s20] sm:$0xff]  ;;  %v2298_v15 = vld [vmem:[#allocation7 + $0x148] ss:$16 sps:$4 sm:$0xff]   ;;  %v2303_v16 = vld [vmem:[#allocation7 + $0x16c] ss:$16 sps:$4 sm:$0xff]   ;;  %vm1632_vm3 = vcmask 1041409  }
  0x52   :  { %822 = vmatpush1.bf16.msra.mxu1 %v2231_v24  ;;  %782 = vmatprep.subr.bf16.mxu0 %v2232_v25  ;;  %v190_v54 = vadd.f32 %v187_v52, %v97_v51  ;;  %v2273_v58 = vld [vmem:[#allocation7 + $0x180] ss:$16 sps:$4 sm:$0xff]   ;;  %v2274_v59 = vld [vmem:[#allocation7 + $0x1a4] ss:$16 sps:$4 sm:$0xff]   ;;  %v2301_v17 = vld [vmem:[#allocation7 + $0x168] ss:$16 sps:$4 sm:$0xff]  }
  0x53   :  { %823 = vmatprep.subr.bf16.mxu1 %v2234_v26  ;;  %v2279_v62 = vld [vmem:[#allocation7 + $0x1a0] ss:$16 sps:$4 sm:$0xff]   ;;  %v2280_v63 = vld [vmem:[#allocation7 + $0x1c4] ss:$16 sps:$4 sm:$0xff]   ;;  %v2306_v18 = vld [vmem:[#allocation7 + $0x18c] ss:$16 sps:$4 sm:$0xff]  }
  0x54   :  { %v192_v56 = vpack.c.bf16 %v190_v54, %v190_v54  ;;  %v2285_v3 = vld [vmem:[#allocation7 + $0x1c0] ss:$16 sps:$4 sm:$0xff]   ;;  %v2286_v4 = vld [vmem:[#allocation7 + $0x1e4] ss:$16 sps:$4 sm:$0xff]   ;;  %v2304_v19 = vld [vmem:[#allocation7 + $0x188] ss:$16 sps:$4 sm:$0xff]  }
  0x55   :  { %783 = vmatpush1.bf16.msra.mxu0 %v2236_v27  ;;  %v2291_v7 = vld [vmem:[#allocation7 + $0x1e0] ss:$16 sps:$4 sm:$0xff]   ;;  %v2309_v20 = vld [vmem:[#allocation7 + $0x1ac] ss:$16 sps:$4 sm:$0xff]   ;;  %v2307_v21 = vld [vmem:[#allocation7 + $0x1a8] ss:$16 sps:$4 sm:$0xff]  }
  0x56   :  { %824 = vmatpush1.bf16.msra.mxu1 %v2237_v28  ;;  %784 = vmatprep.subr.bf16.mxu0 %v2238_v29  ;;  %v189_v8 = vld [vmem:[%s3179_s26] sm:$0xff]  ;;  %v2312_v22 = vld [vmem:[#allocation7 + $0x1cc] ss:$16 sps:$4 sm:$0xff]   ;;  %v2310_v23 = vld [vmem:[#allocation7 + $0x1c8] ss:$16 sps:$4 sm:$0xff]   ;;  %vm1634_vm4 = vcmask 1042434  }
  0x57   :  { %825 = vmatprep.subr.bf16.mxu1 %v2240_v30  ;;  %802 = vmatprep.mubr.bf16.mxu0 %v192_v56  ;;  %v191_v10 = vpack.c.bf16 %v189_v8, %v189_v8  ;;  %v2315_v24 = vld [vmem:[#allocation7 + $0x1ec] ss:$16 sps:$4 sm:$0xff]   ;;  %v2313_v25 = vld [vmem:[#allocation7 + $0x1e8] ss:$16 sps:$4 sm:$0xff]   ;;  %vm1636_vm5 = vcmask 1043459   ;;  %vm1638_vm6 = vcmask 1044484  }
  0x58   :  { %v2318_v26 = vld [vmem:[#allocation7 + $0x20c] ss:$16 sps:$4 sm:$0xff]   ;;  %v2316_v27 = vld [vmem:[#allocation7 + $0x208] ss:$16 sps:$4 sm:$0xff]   ;;  %vm1640_vm7 = vcmask 1045509   ;;  %vm1642_vm8 = vcmask 1046534  }
  0x59   :  { %785 = vmatpush1.bf16.msra.mxu0 %v2242_v31  ;;  %v2321_v28 = vld [vmem:[#allocation7 + $0x22c] ss:$16 sps:$4 sm:$0xff]   ;;  %v2319_v29 = vld [vmem:[#allocation7 + $0x228] ss:$16 sps:$4 sm:$0xff]   ;;  %vm1644_vm9 = vcmask 1047559   ;;  %s2627_s20 = smov [#allocation9]  }
  0x5a   :  { %826 = vmatpush1.bf16.msra.mxu1 %v2243_v32  ;;  %786 = vmatprep.subr.bf16.mxu0 %v2244_v34  ;;  %v2324_v30 = vld [vmem:[#allocation7 + $0x24c] ss:$16 sps:$4 sm:$0xff]   ;;  %v2322_v31 = vld [vmem:[#allocation7 + $0x248] ss:$16 sps:$4 sm:$0xff]   ;;  %s1912_s23 = sshll.u32 %s2627_s20, 4  ;;  %s2628_s24 = smov [#allocation8]   ;;  %s1913_s23 = int_to_ptr.vmem [resolvable:$true] %s1912_s23 }
  0x5b   :  { %852 = vmatprep.subr.bf16.mxu1 %v2248_v35  ;;  %v2327_v32 = vld [vmem:[#allocation7 + $0x26c] ss:$16 sps:$4 sm:$0xff]   ;;  %v2325_v33 = vld [vmem:[#allocation7 + $0x268] ss:$16 sps:$4 sm:$0xff]   ;;  %s2542_s26 = scalar_lea.vmem %s1913_s23, 256  ;;  %p2547_p11 = scmp.lt.s32.totalorder %s1913_s23, %s1913_s23 }
  0x5c   :  { %v2330_v34 = vld [vmem:[#allocation7 + $0x28c] ss:$16 sps:$4 sm:$0xff]   ;;  %v2328_v35 = vld [vmem:[#allocation7 + $0x288] ss:$16 sps:$4 sm:$0xff]   ;;  %p2543_p10 = scmp.ne.s32.totalorder %s1913_s23, %s2542_s26  ;;  %p2548_p12 = scmp.lt.s32.totalorder %s2542_s26, %s2542_s26 }
  0x5d   :  { %844 = vmatmul.mubr.bf16.vlgmr.msra.gmra.mrb[0].mxu1 %v2770_v36  ;;  %787 = vmatpush1.bf16.msra.mxu0 %v2249_v38  ;;  %v2331_v38 = vld [vmem:[#allocation7 + $0x2a8] ss:$16 sps:$4 sm:$0xff]  }
  0x5e   :  { %853 = vmatpush1.bf16.msra.mxu1 %v2246_v37  ;;  %788 = vmatprep.subr.bf16.mxu0 %v2250_v39  ;;  %v2333_v37 = vld [vmem:[#allocation7 + $0x2ac] ss:$16 sps:$4 sm:$0xff]   ;;  %p2549_p13 = por %p2548_p12, %p2547_p11 }
  0x5f   :  { %854 = vmatprep.subr.bf16.mxu1 %v2254_v40  ;;  %884 = vmatprep.mubr.bf16.mxu1 %v192_v56  ;;  %v2336_v39 = vld [vmem:[#allocation7 + $0x2cc] ss:$16 sps:$4 sm:$0xff]  }
  0x60   :  { %v2339_v40 = vld [vmem:[#allocation7 + $0x2ec] ss:$16 sps:$4 sm:$0xff]   ;;  %p2550_p0 = pnand %p2549_p13, %p2543_p10 }
  0x61   :  { %789 = vmatpush1.bf16.msra.mxu0 %v2255_v42 }
  0x62   :  { %855 = vmatpush1.bf16.msra.mxu1 %v2252_v41  ;;  %790 = vmatprep.subr.bf16.mxu0 %v2256_v43  ;;  %v2337_v41 = vld [vmem:[#allocation7 + $0x2e8] ss:$16 sps:$4 sm:$0xff]  }
  0x63   :  { %856 = vmatprep.subr.bf16.mxu1 %v2260_v44 }
  0x65   :  { %791 = vmatpush1.bf16.msra.mxu0 %v2261_v46  ;;  %v132_v46 = vlaneseq }
  0x66   :  { %857 = vmatpush1.bf16.msra.mxu1 %v2258_v45  ;;  %792 = vmatprep.subr.bf16.mxu0 %v2262_v47 }
  0x67   :  { %858 = vmatprep.subr.bf16.mxu1 %v2266_v48  ;;  %v2781_v47 = vshrl.u32 %v132_v46, 7 }
  0x69   :  { %793 = vmatpush1.bf16.msra.mxu0 %v2267_v50  ;;  %v2784_v48 = vsub.s32 0, %v2781_v47  ;;  %v138_v50 = vsub.s32 1, %v2781_v47 }
  0x6a   :  { %859 = vmatpush1.bf16.msra.mxu1 %v2264_v49  ;;  %794 = vmatprep.subr.bf16.mxu0 %v2268_v53  ;;  %v130_v49 = vld [vmem:[%s3165_s7] sm:$0xf] }
  0x6b   :  { %860 = vmatprep.subr.bf16.mxu1 %v2272_v55  ;;  %v135_v51 = vrot.slane %v130_v49, %v2784_v48 }
  0x6d   :  { %795 = vmatpush1.bf16.msra.mxu0 %v2273_v58 }
  0x6e   :  { %861 = vmatpush1.bf16.msra.mxu1 %v2270_v57  ;;  %796 = vmatprep.subr.bf16.mxu0 %v2274_v59 }
  0x6f   :  { %862 = vmatprep.subr.bf16.mxu1 %v2278_v60 }
  0x71   :  { %797 = vmatpush1.bf16.msra.mxu0 %v2279_v62  ;;  %v142_v62 = vsub.s32 2, %v2781_v47 }
  0x72   :  { %863 = vmatpush1.bf16.msra.mxu1 %v2276_v61  ;;  %798 = vmatprep.subr.bf16.mxu0 %v2280_v63  ;;  %v146_v63 = vsub.s32 3, %v2781_v47 }
  0x73   :  { %864 = vmatprep.subr.bf16.mxu1 %v2284_v1 }
  0x75   :  { %799 = vmatpush1.bf16.msra.mxu0 %v2285_v3  ;;  %v143_v3 = vrot.slane %v130_v49, %v142_v62  ;;  %v2353_v62 = vld [vmem:[%s3172_s14 + $0x28] sm:$0xff]  }
  0x76   :  { %865 = vmatpush1.bf16.msra.mxu1 %v2282_v2  ;;  %800 = vmatprep.subr.bf16.mxu0 %v2286_v4 }
  0x77   :  { %866 = vmatprep.subr.bf16.mxu1 %v2290_v5  ;;  %v147_v5 = vrot.slane %v130_v49, %v146_v63  ;;  %v2354_v63 = vld [vmem:[%s3172_s14 + $0x30] sm:$0xff]  }
  0x79   :  { %801 = vmatpush1.bf16.msra.mxu0 %v2291_v7 }
  0x7a   :  { %867 = vmatpush1.bf16.msra.mxu1 %v2288_v6 }
  0x7b   :  { %868 = vmatprep.subr.bf16.mxu1 %v2294_v9 }
  0x7c   :  { %803 = vmatmul.mubr.bf16.vlgmr.msra.gmra.mrb[0].mxu0 %v191_v10 }
  0x7e   :  { %869 = vmatpush1.bf16.msra.mxu1 %v2292_v11 }
  0x7f   :  { %870 = vmatprep.subr.bf16.mxu1 %v2297_v12 }
  0x82   :  { %871 = vmatpush1.bf16.msra.mxu1 %v2295_v13 }
  0x83   :  { %872 = vmatprep.subr.bf16.mxu1 %v2300_v14 }
  0x86   :  { %873 = vmatpush1.bf16.msra.mxu1 %v2298_v15  ;;  %v188_v15 = vld [vmem:[#allocation5] sm:$0xff] }
  0x87   :  { %874 = vmatprep.subr.bf16.mxu1 %v2303_v16 }
  0x8a   :  { %875 = vmatpush1.bf16.msra.mxu1 %v2301_v17 }
  0x8b   :  { %876 = vmatprep.subr.bf16.mxu1 %v2306_v18 }
  0x8e   :  { %877 = vmatpush1.bf16.msra.mxu1 %v2304_v19 }
  0x8f   :  { %878 = vmatprep.subr.bf16.mxu1 %v2309_v20 }
  0x92   :  { %879 = vmatpush1.bf16.msra.mxu1 %v2307_v21 }
  0x93   :  { %880 = vmatprep.subr.bf16.mxu1 %v2312_v22 }
  0x96   :  { %881 = vmatpush1.bf16.msra.mxu1 %v2310_v23 }
  0x97   :  { %882 = vmatprep.subr.bf16.mxu1 %v2315_v24 }
  0x9a   :  { %883 = vmatpush1.bf16.msra.mxu1 %v2313_v25 }
  0x9b   :  { %893 = vmatprep.subr.bf16.mxu1 %v2318_v26 }
  0x9d   :  { %885 = vmatmul.mubr.bf16.vlgmr.msra.gmra.mrb[4].mxu1 %v191_v10 }
  0x9e   :  { %894 = vmatpush1.bf16.msra.mxu1 %v2316_v27  ;;  %925 = vmatprep.mubr.bf16.mxu1 %v2623_v0  ;;  %v2334_v0 = vld [vmem:[#allocation7 + $0x2c8] ss:$16 sps:$4 sm:$0xff]  }
  0x9f   :  { %895 = vmatprep.subr.bf16.mxu1 %v2321_v28 }
  0xa2   :  { %896 = vmatpush1.bf16.msra.mxu1 %v2319_v29 }
  0xa3   :  { %897 = vmatprep.subr.bf16.mxu1 %v2324_v30  ;;  %v2340_v30 = vld [vmem:[%s3168_s10] sm:$0xff]  }
  0xa6   :  { %898 = vmatpush1.bf16.msra.mxu1 %v2322_v31  ;;  %v2624_v31 = vmov 0.0  }
  0xa7   :  { %899 = vmatprep.subr.bf16.mxu1 %v2327_v32  ;;  %2120 = vmatprep.subr.bf16.mxu0 %v2624_v31  ;;  %v2341_v32 = vld [vmem:[%s3168_s10 + $0x8] sm:$0xff]  }
  0xa8   :  { %2121 = vmatpush3.bf16.msra.mxu0 %v2340_v30  ;;  %2136 = vmatprep.mubr.msk.bf16.mxu0 %vm2625_vm0, %v2624_v31 }
  0xa9   :  { %2122 = vmatprep.subr.bf16.mxu0 %v2624_v31 }
  0xaa   :  { %900 = vmatpush1.bf16.msra.mxu1 %v2325_v33  ;;  %v2342_v33 = vld [vmem:[%s3168_s10 + $0x10] sm:$0xff]  }
  0xab   :  { %901 = vmatprep.subr.bf16.mxu1 %v2330_v34  ;;  %v2343_v34 = vld [vmem:[%s3168_s10 + $0x18] sm:$0xff]  }
  0xac   :  { %2123 = vmatpush3.bf16.msra.mxu0 %v2341_v32 }
  0xad   :  { %2124 = vmatprep.subr.bf16.mxu0 %v2624_v31 }
  0xae   :  { %902 = vmatpush1.bf16.msra.mxu1 %v2328_v35  ;;  %v2344_v35 = vld [vmem:[%s3168_s10 + $0x20] sm:$0xff]  }
  0xaf   :  { %903 = vmatprep.subr.bf16.mxu1 %v2333_v37  ;;  %v2345_v37 = vld [vmem:[%s3168_s10 + $0x28] sm:$0xff]  }
  0xb0   :  { %2125 = vmatpush3.bf16.msra.mxu0 %v2342_v33 }
  0xb1   :  { %2126 = vmatprep.subr.bf16.mxu0 %v2624_v31 }
  0xb2   :  { %904 = vmatpush1.bf16.msra.mxu1 %v2331_v38  ;;  %v2346_v38 = vld [vmem:[%s3168_s10 + $0x30] sm:$0xff]  }
  0xb3   :  { %905 = vmatprep.subr.bf16.mxu1 %v2336_v39  ;;  %v2347_v39 = vld [vmem:[%s3168_s10 + $0x38] sm:$0xff]  }
  0xb4   :  { %2127 = vmatpush3.bf16.msra.mxu0 %v2343_v34 }
  0xb5   :  { %2128 = vmatprep.subr.bf16.mxu0 %v2624_v31 }
  0xb6   :  { %906 = vmatpush1.bf16.msra.mxu1 %v2334_v0  ;;  %v2348_v0 = vld [vmem:[%s3172_s14] sm:$0xff]  }
  0xb7   :  { %907 = vmatprep.subr.bf16.mxu1 %v2339_v40  ;;  %v2349_v40 = vld [vmem:[%s3172_s14 + $0x8] sm:$0xff]  }
  0xb8   :  { %2129 = vmatpush3.bf16.msra.mxu0 %v2344_v35 }
  0xb9   :  { %2130 = vmatprep.subr.bf16.mxu0 %v2624_v31 }
  0xba   :  { %908 = vmatpush1.bf16.msra.mxu1 %v2337_v41  ;;  %v2350_v41 = vld [vmem:[%s3172_s14 + $0x10] sm:$0xff]  }
  0xbb   :  { %2140 = vmatprep.subr.bf16.mxu1 %v2348_v0 }
  0xbc   :  { %2131 = vmatpush3.bf16.msra.mxu0 %v2345_v37 }
  0xbd   :  { %926 = vmatmul.mubr.bf16.vlgmr.msra.gmra.mrb[4].mxu1 %v2770_v36  ;;  %v139_v36 = vrot.slane %v130_v49, %v138_v50  ;;  %2132 = vmatprep.subr.bf16.mxu0 %v2624_v31 }
  0xbe   :  { %2141 = vmatpush3.bf16.msra.mxu1 %v2348_v0 }
  0xbf   :  { %2142 = vmatprep.subr.bf16.mxu1 %v2349_v40 }
  0xc0   :  { %2133 = vmatpush3.bf16.msra.mxu0 %v2346_v38 }
  0xc1   :  { %2134 = vmatprep.subr.bf16.mxu0 %v2624_v31 }
  0xc2   :  { %2143 = vmatpush3.bf16.msra.mxu1 %v2349_v40 }
  0xc3   :  { %2144 = vmatprep.subr.bf16.mxu1 %v2350_v41 }
  0xc4   :  { %2135 = vmatpush3.bf16.msra.mxu0 %v2347_v39 }
  0xc6   :  { %2145 = vmatpush3.bf16.msra.mxu1 %v2350_v41  ;;  %v120_v41 = vld [vmem:[%s3161_s3 + $0x30] sm:$0xff] }
 0x130   :  { %v845_v42 = vpop.f32.mrb[0].mxu1 }
 0x131   :  { %v847_v43 = vpop.f32.mrb[1].mxu1 }
 0x132   :  { %v849_v44 = vpop.f32.mrb[2].mxu1 }
 0x133   :  { %v850_v45 = vpop.f32.mrb[3].mxu1 }
 0x14f   :  { %v804_v52 = vpop.f32.mrb[0].mxu0 }
 0x150   :  { %v805_v53 = vadd.f32 %v804_v52, %v135_v51  ;;  %v806_v54 = vpop.f32.mrb[1].mxu0 }
 0x151   :  { %v807_v55 = vadd.f32 %v806_v54, %v139_v36  ;;  %v808_v56 = vpop.f32.mrb[2].mxu0  ;;  %v1944_v54 = vld [vmem:[%s3166_s8] ss:$0 sm:$0xff] }
 0x152   :  { %v846_v57 = vadd.f32 %v845_v42, %v805_v53  ;;  %v809_v58 = vpop.f32.mrb[3].mxu0  ;;  %v2351_v42 = vld [vmem:[%s3172_s14 + $0x18] sm:$0xff]  }
 0x153   :  { %v848_v59 = vadd.f32 %v847_v43, %v807_v55  ;;  %2146 = vmatprep.subr.bf16.mxu1 %v2351_v42  ;;  %v2352_v43 = vld [vmem:[%s3172_s14 + $0x20] sm:$0xff]  }
 0x154   :  { %v2043_v61 = vmul.f32 -1.442695, %v846_v57  ;;  %2147 = vmatpush3.bf16.msra.mxu1 %v2351_v42  ;;  %v1945_v57 = vld [vmem:[%s3167_s9] ss:$0 sm:$0xff]  ;;  %v121_v42 = vld [vmem:[%s3161_s3 + $0x38] sm:$0xff] }
 0x155   :  { %v2044_v60 = vmul.f32 -1.442695, %v848_v59  ;;  %2148 = vmatprep.subr.bf16.mxu1 %v2352_v43 }
 0x157   :  { %2404 = vpow2.f32 %v2044_v60 }
 0x158   :  { %2406 = vpow2.f32 %v2043_v61  ;;  %2149 = vmatpush3.bf16.msra.mxu1 %v2352_v43 }
 0x159   :  { %2150 = vmatprep.subr.bf16.mxu1 %v2353_v62 }
 0x15c   :  { %2151 = vmatpush3.bf16.msra.mxu1 %v2353_v62 }
 0x15d   :  { %2152 = vmatprep.subr.bf16.mxu1 %v2354_v63 }
 0x160   :  { %2153 = vmatpush3.bf16.msra.mxu1 %v2354_v63 }
 0x161   :  { %v2405_v1 = vpop.eup %2404 }
 0x162   :  { %v2407_v2 = vpop.eup %2406  ;;  %v944_v4 = vadd.f32 1.0, %v2405_v1  ;;  %v2355_v1 = vld [vmem:[%s3172_s14 + $0x38] sm:$0xff]  }
 0x163   :  { %v943_v6 = vadd.f32 1.0, %v2407_v2  ;;  %2154 = vmatprep.subr.bf16.mxu1 %v2355_v1  ;;  %v2626_v2 = vmov 1966171168  }
 0x164   :  { %2408 = vrcp.f32 %v944_v4  ;;  %2155 = vmatpush3.bf16.msra.mxu1 %v2355_v1 }
 0x165   :  { %2410 = vrcp.f32 %v943_v6 }
 0x16e   :  { %v2409_v14 = vpop.eup %2408 }
 0x16f   :  { %v2411_v16 = vpop.eup %2410  ;;  %v953_v19 = vmul.f32 %v2409_v14, %v188_v15 }
 0x190   :  { %v927_v7 = vpop.f32.mrb[4].mxu1 }
 0x191   :  { %v2176_v8 = vadd.f32 %v927_v7, %v143_v3  ;;  %v929_v9 = vpop.f32.mrb[5].mxu1  ;;  %v1087_v3 = vunpack.c.l.s4 %v2626_v2 }
 0x192   :  { %v2177_v10 = vadd.f32 %v929_v9, %v147_v5  ;;  %v931_v11 = vpop.f32.mrb[6].mxu1  ;;  %v1946_v5 = vld [vmem:[%s3169_s11] ss:$0 sm:$0xff] }
 0x193   :  { %v2045_v12 = vmul.f32 -1.442695, %v2176_v8  ;;  %v932_v13 = vpop.f32.mrb[7].mxu1  ;;  %v1088_v4 = vunpack.c.0.s8 %v1087_v3 }
 0x194   :  { %2412 = vtanh.f32 %v2177_v10 }
 0x195   :  { %2414 = vpow2.f32 %v2045_v12  ;;  %v1091_v6 = vsub.s32 %v1088_v4, %v2781_v47 }
 0x19e   :  { %v2413_v17 = vpop.eup %2412 }
 0x19f   :  { %v2415_v18 = vpop.eup %2414  ;;  %v954_v20 = vmul.f32 %v2413_v17, %v2411_v16 }
 0x1a0   :  { %v945_v21 = vadd.f32 1.0, %v2415_v18 }
 0x1a1   :  { %v955_v22 = vadd.f32 %v954_v20, %v953_v19  ;;  %v114_v19 = vld [vmem:[%s3161_s3] sm:$0xff]  ;;  %v115_v20 = vld [vmem:[%s3161_s3 + $0x8] sm:$0xff] }
 0x1a2   :  { %2416 = vrcp.f32 %v945_v21 }
 0x1a3   :  { %2418 = vtanh.f32 %v955_v22  ;;  %1892 = vst [vmem:[#allocation11] sm:$0xff] %v955_v22  ;;  %v116_v22 = vld [vmem:[%s3161_s3 + $0x10] sm:$0xff] }
 0x1ac   :  { %v2417_v23 = vpop.eup %2416 }
 0x1ad   :  { %v2419_v24 = vpop.eup %2418 }
 0x1ae   :  { %v2795_v25 = vmul.f32 %v2419_v24, %v2417_v23  ;;  %v117_v23 = vld [vmem:[%s3161_s3 + $0x18] sm:$0xff] }
 0x1b0   :  { %958 = vadd.xlane.f32.xlu0 %v2795_v25  ;;  %1889 = vst [vmem:[#allocation9] sm:$0xff] %v2795_v25  ;;  %v1615_v61 = vpack.c.bf16 %v2795_v25, %v2795_v25 }
 0x23d   :  { %v959_v26 = vpop.xlane.xlu0 %958 }
 0x23e   :  { %v961_v27 = vmul.f32 0.0078125, %v959_v26  ;;  %v118_v26 = vld [vmem:[%s3161_s3 + $0x20] sm:$0xff] }
 0x240   :  { %v962_v28 = vsub.f32 %v2795_v25, %v961_v27  ;;  %v119_v27 = vld [vmem:[%s3161_s3 + $0x28] sm:$0xff] }
 0x242   :  { %v963_v29 = vmul.f32 %v962_v28, %v962_v28  ;;  %v974_v55 = vmul.f32 %v1944_v54, %v962_v28 }
 0x244   :  { %964 = vadd.xlane.f32.xlu0 %v963_v29 }
 0x2d1   :  { %v965_v44 = vpop.xlane.xlu0 %964 }
 0x2d2   :  { %v966_v45 = vmul.f32 0.007874016, %v965_v44  ;;  %v122_v44 = vld [vmem:[%s3161_s3 + $0x40] sm:$0xff] }
 0x2d4   :  { %2420 = vrsqrt.f32 %v966_v45  ;;  %vm969_vm1 = vcmp.eq.f32.partialorder %v966_v45, inf  ;;  %v972_v51 = vand.u32 2147483648, %v966_v45  ;;  %vm971_vm2 = vcmp.eq.f32.partialorder %v966_v45, 0.0 }
 0x2de   :  { %v2421_v46 = vpop.eup %2420 }
 0x2df   :  { %v968_v49 = vmul.f32 %v2421_v46, %v966_v45 }
 0x2e1   :  { %v970_v36 = vsel %vm969_vm1, %v966_v45, %v968_v49  ;;  %v123_v45 = vld [vmem:[%s3161_s3 + $0x48] sm:$0xff] }
 0x2e2   :  { %v973_v52 = vsel %vm971_vm2, %v972_v51, %v970_v36 }
 0x2e3   :  { %v975_v53 = vadd.f32 1e-06, %v973_v52 }
 0x2e5   :  { %2422 = vrcp.f32 %v975_v53 }
 0x2ef   :  { %v2423_v56 = vpop.eup %2422 }
 0x2f0   :  { %v977_v58 = vmul.f32 %v2423_v56, %v974_v55 }
 0x2f2   :  { %v978_v59 = vadd.f32 %v1945_v57, %v977_v58  ;;  %v124_v57 = vld [vmem:[%s3161_s3 + $0x50] sm:$0xff]  ;;  %v125_v58 = vld [vmem:[%s3161_s3 + $0x58] sm:$0xff] }
 0x2f4   :  { %v979_v60 = vpack.c.bf16 %v978_v59, %v978_v59 }
 0x2f6   :  { %2137 = vmatmul.mubr.bf16.vlgmr.msra.gmra.mrb[4].mxu0 %v979_v60  ;;  %v126_v60 = vld [vmem:[%s3161_s3 + $0x60] sm:$0xff] }
 0x2f7   :  { %1872 = vmatprep.mubr.bf16.mxu0 %v1615_v61  ;;  %v127_v61 = vld [vmem:[%s3161_s3 + $0x68] sm:$0xff] }
 0x3c9   :  { %v1078_v7 = vpop.f32.mrb[4].mxu0 }
 0x3ca   :  { %v1079_v8 = vadd.f32 %v1946_v5, %v1078_v7  ;;  %v2138_v9 = vpop.f32.mrb[5].mxu0  ;;  %v128_v7 = vld [vmem:[%s3161_s3 + $0x70] sm:$0xff] }
 0x3cb   :  { %v1081_v10 = vpop.f32.mrb[6].mxu0 }
 0x3cc   :  { %v1085_v11 = vcombine.high %v1079_v8, %v1079_v8  ;;  %v1092_v12 = vrot.slane %v1079_v8, %v1091_v6  ;;  %v2139_v13 = vpop.f32.mrb[7].mxu0  ;;  %v129_v8 = vld [vmem:[%s3161_s3 + $0x78] sm:$0xff]  ;;  %s2629_s3 = smov [#allocation11]  }
 0x3cd   :  { %v2356_v13 = vld [vmem:[%s3170_s12] ss:$8 sps:$4 sm:$0xff]   ;;  %s1924_s8 = sshll.u32 %s2629_s3, 4  ;;  %s3104_s8 = int_to_ptr.vmem [resolvable:$true] %s1924_s8 }
 0x3ce   :  { %v1100_v14 = vcombine.high %v1092_v12, %v1092_v12  ;;  %v1108_v15 = vrot.slane %v1092_v12, %v1091_v6  ;;  %v1099_v16 = vrot.slane %v1085_v11, %v1091_v6  ;;  %v2358_v12 = vld [vmem:[%s3170_s12 + $0x4] ss:$8 sps:$4 sm:$0xff]  }
 0x3cf   :  { %1840 = vmatprep.subr.bf16.mxu0 %v2358_v12 }
 0x3d0   :  { %v1122_v17 = vrot.slane %v1100_v14, %v1091_v6  ;;  %v1130_v18 = vcombine.high %v1108_v15, %v1108_v15  ;;  %v1137_v21 = vrot.slane %v1108_v15, %v2784_v48  ;;  %v1115_v28 = vrot.slane %v1099_v16, %v1091_v6  ;;  %1841 = vmatpush1.bf16.msra.mxu0 %v2356_v13  ;;  %v2361_v14 = vld [vmem:[%s3170_s12 + $0x14] ss:$8 sps:$4 sm:$0xff]   ;;  %v2359_v15 = vld [vmem:[%s3170_s12 + $0x10] ss:$8 sps:$4 sm:$0xff]  }
 0x3d1   :  { %v1101_v38 = vcombine.high %v1099_v16, %v1099_v16  ;;  %1842 = vmatprep.subr.bf16.mxu0 %v2361_v14  ;;  %v2364_v16 = vld [vmem:[%s3170_s12 + $0x24] ss:$8 sps:$4 sm:$0xff]  }
 0x3d2   :  { %v1132_v24 = vcombine.high %v1122_v17, %v1122_v17  ;;  %v1141_v25 = vrot.slane %v1122_v17, %v2784_v48  ;;  %v1174_v29 = vmul.f32 %v1137_v21, %v114_v19  ;;  %v1175_v30 = vmul.f32 %v1137_v21, %v115_v20  ;;  %v2362_v17 = vld [vmem:[%s3170_s12 + $0x20] ss:$8 sps:$4 sm:$0xff]   ;;  %v2365_v19 = vld [vmem:[%s3170_s12 + $0x30] ss:$8 sps:$4 sm:$0xff]   ;;  %v2370_v20 = vld [vmem:[%s3170_s12 + $0x44] ss:$8 sps:$4 sm:$0xff]  }
 0x3d3   :  { %v1145_v31 = vrot.slane %v1130_v18, %v2784_v48  ;;  %v1153_v43 = vrot.slane %v1115_v28, %v2784_v48  ;;  %v1129_v46 = vrot.slane %v1101_v38, %v1091_v6  ;;  %v1131_v36 = vcombine.high %v1115_v28, %v1115_v28  ;;  %v2367_v18 = vld [vmem:[%s3170_s12 + $0x34] ss:$8 sps:$4 sm:$0xff]   ;;  %v2368_v21 = vld [vmem:[%s3170_s12 + $0x40] ss:$8 sps:$4 sm:$0xff]   ;;  %v2382_v28 = vld [vmem:[%s3170_s12 + $0x84] ss:$8 sps:$4 sm:$0xff]  }
 0x3d4   :  { %v1176_v32 = vmul.f32 %v1141_v25, %v116_v22  ;;  %v1177_v33 = vmul.f32 %v1141_v25, %v117_v23  ;;  %v1190_v34 = vpack.c.bf16 %v1175_v30, %v1174_v29  ;;  %v1149_v0 = vrot.slane %v1132_v24, %v2784_v48  ;;  %1843 = vmatpush1.bf16.msra.mxu0 %v2359_v15  ;;  %v2373_v22 = vld [vmem:[%s3170_s12 + $0x54] ss:$8 sps:$4 sm:$0xff]   ;;  %v2371_v23 = vld [vmem:[%s3170_s12 + $0x50] ss:$8 sps:$4 sm:$0xff]   ;;  %v2376_v24 = vld [vmem:[%s3170_s12 + $0x64] ss:$8 sps:$4 sm:$0xff]  }
 0x3d5   :  { %v1178_v35 = vmul.f32 %v1145_v31, %v118_v26  ;;  %v1179_v37 = vmul.f32 %v1145_v31, %v119_v27  ;;  %v1182_v52 = vmul.f32 %v1153_v43, %v122_v44  ;;  %v1183_v53 = vmul.f32 %v1153_v43, %v123_v45  ;;  %1844 = vmatprep.subr.bf16.mxu0 %v2364_v16  ;;  %v2374_v25 = vld [vmem:[%s3170_s12 + $0x60] ss:$8 sps:$4 sm:$0xff]   ;;  %v2379_v26 = vld [vmem:[%s3170_s12 + $0x74] ss:$8 sps:$4 sm:$0xff]   ;;  %v2377_v27 = vld [vmem:[%s3170_s12 + $0x70] ss:$8 sps:$4 sm:$0xff]  }
 0x3d6   :  { %v1191_v39 = vpack.c.bf16 %v1177_v33, %v1176_v32  ;;  %2156 = vmatprep.mubr.bf16.mxu1 %v1190_v34  ;;  %v1180_v49 = vmul.f32 %v1149_v0, %v120_v41  ;;  %v1181_v51 = vmul.f32 %v1149_v0, %v121_v42  ;;  %v1157_v55 = vrot.slane %v1129_v46, %v2784_v48  ;;  %v2380_v29 = vld [vmem:[%s3170_s12 + $0x80] ss:$8 sps:$4 sm:$0xff]   ;;  %v2385_v30 = vld [vmem:[%s3170_s12 + $0x94] ss:$8 sps:$4 sm:$0xff]   ;;  %v2383_v31 = vld [vmem:[%s3170_s12 + $0x90] ss:$8 sps:$4 sm:$0xff]  }
 0x3d7   :  { %v1192_v40 = vpack.c.bf16 %v1179_v37, %v1178_v35  ;;  %v1194_v56 = vpack.c.bf16 %v1183_v53, %v1182_v52  ;;  %v1161_v59 = vrot.slane %v1131_v36, %v2784_v48  ;;  %v1133_v1 = vcombine.high %v1129_v46, %v1129_v46  ;;  %v2388_v32 = vld [vmem:[%s3170_s12 + $0xa4] ss:$8 sps:$4 sm:$0xff]   ;;  %v2386_v33 = vld [vmem:[%s3170_s12 + $0xa0] ss:$8 sps:$4 sm:$0xff]   ;;  %v2391_v34 = vld [vmem:[%s3170_s12 + $0xb4] ss:$8 sps:$4 sm:$0xff]  }
 0x3d8   :  { %2157 = vmatmul.mubr.bf16.vlgmr.msra.gmra.mrb[8].mxu1 %v1191_v39  ;;  %v1193_v54 = vpack.c.bf16 %v1181_v51, %v1180_v49  ;;  %v1184_v62 = vmul.f32 %v1157_v55, %v124_v57  ;;  %v1185_v63 = vmul.f32 %v1157_v55, %v125_v58  ;;  %1845 = vmatpush1.bf16.msra.mxu0 %v2362_v17  ;;  %v2389_v35 = vld [vmem:[%s3170_s12 + $0xb0] ss:$8 sps:$4 sm:$0xff]   ;;  %v2394_v37 = vld [vmem:[%s3170_s12 + $0xc4] ss:$8 sps:$4 sm:$0xff]   ;;  %v2392_v38 = vld [vmem:[%s3170_s12 + $0xc0] ss:$8 sps:$4 sm:$0xff]  }
 0x3d9   :  { %2160 = vmatprep.mubr.bf16.mxu1 %v1192_v40  ;;  %v1186_v2 = vmul.f32 %v1161_v59, %v126_v60  ;;  %v1187_v3 = vmul.f32 %v1161_v59, %v127_v61  ;;  %v1165_v5 = vrot.slane %v1133_v1, %v2784_v48  ;;  %1846 = vmatprep.subr.bf16.mxu0 %v2367_v18  ;;  %v2397_v39 = vld [vmem:[%s3170_s12 + $0xd4] ss:$8 sps:$4 sm:$0xff]   ;;  %v2395_v0 = vld [vmem:[%s3170_s12 + $0xd0] ss:$8 sps:$4 sm:$0xff]   ;;  %v2400_v40 = vld [vmem:[%s3170_s12 + $0xe4] ss:$8 sps:$4 sm:$0xff]  }
 0x3da   :  { %v1195_v4 = vpack.c.bf16 %v1185_v63, %v1184_v62  ;;  %v2398_v41 = vld [vmem:[%s3170_s12 + $0xe0] ss:$8 sps:$4 sm:$0xff]   ;;  %v2403_v42 = vld [vmem:[%s3170_s12 + $0xf4] ss:$8 sps:$4 sm:$0xff]   ;;  %v2401_v43 = vld [vmem:[%s3170_s12 + $0xf0] ss:$8 sps:$4 sm:$0xff]  }
 0x3db   :  { %v1196_v6 = vpack.c.bf16 %v1187_v3, %v1186_v2  ;;  %v1188_v9 = vmul.f32 %v1165_v5, %v128_v7  ;;  %v1189_v10 = vmul.f32 %v1165_v5, %v129_v8 }
 0x3dc   :  { %1847 = vmatpush1.bf16.msra.mxu0 %v2365_v19 }
 0x3dd   :  { %v1197_v11 = vpack.c.bf16 %v1189_v10, %v1188_v9  ;;  %1848 = vmatprep.subr.bf16.mxu0 %v2370_v20 }
 0x3e0   :  { %2161 = vmatmul.mubr.bf16.gmra.mrb[12].mxu1 %v1193_v54  ;;  %1849 = vmatpush1.bf16.msra.mxu0 %v2368_v21 }
 0x3e1   :  { %2164 = vmatprep.mubr.bf16.mxu1 %v1194_v56  ;;  %1850 = vmatprep.subr.bf16.mxu0 %v2373_v22 }
 0x3e4   :  { %1851 = vmatpush1.bf16.msra.mxu0 %v2371_v23 }
 0x3e5   :  { %1852 = vmatprep.subr.bf16.mxu0 %v2376_v24 }
 0x3e8   :  { %2165 = vmatmul.mubr.bf16.gmra.mrb[16].mxu1 %v1195_v4  ;;  %1853 = vmatpush1.bf16.msra.mxu0 %v2374_v25 }
 0x3e9   :  { %2168 = vmatprep.mubr.bf16.mxu1 %v1196_v6  ;;  %1854 = vmatprep.subr.bf16.mxu0 %v2379_v26 }
 0x3ec   :  { %1855 = vmatpush1.bf16.msra.mxu0 %v2377_v27 }
 0x3ed   :  { %1856 = vmatprep.subr.bf16.mxu0 %v2382_v28 }
 0x3f0   :  { %2169 = vmatmul.mubr.bf16.gmra.mrb[20].mxu1 %v1197_v11  ;;  %1857 = vmatpush1.bf16.msra.mxu0 %v2380_v29 }
 0x3f1   :  { %1858 = vmatprep.subr.bf16.mxu0 %v2385_v30 }
 0x3f4   :  { %1859 = vmatpush1.bf16.msra.mxu0 %v2383_v31 }
 0x3f5   :  { %1860 = vmatprep.subr.bf16.mxu0 %v2388_v32 }
 0x3f8   :  { %1861 = vmatpush1.bf16.msra.mxu0 %v2386_v33 }
 0x3f9   :  { %1862 = vmatprep.subr.bf16.mxu0 %v2391_v34 }
 0x3fc   :  { %1863 = vmatpush1.bf16.msra.mxu0 %v2389_v35 }
 0x3fd   :  { %1864 = vmatprep.subr.bf16.mxu0 %v2394_v37 }
 0x400   :  { %1865 = vmatpush1.bf16.msra.mxu0 %v2392_v38 }
 0x401   :  { %1866 = vmatprep.subr.bf16.mxu0 %v2397_v39 }
 0x404   :  { %1867 = vmatpush1.bf16.msra.mxu0 %v2395_v0 }
 0x405   :  { %1868 = vmatprep.subr.bf16.mxu0 %v2400_v40 }
 0x408   :  { %1869 = vmatpush1.bf16.msra.mxu0 %v2398_v41 }
 0x409   :  { %1870 = vmatprep.subr.bf16.mxu0 %v2403_v42 }
 0x40c   :  { %1871 = vmatpush1.bf16.msra.mxu0 %v2401_v43 }
 0x4ab   :  { %v2158_v44 = vpop.f32.mrb[8].mxu1 }
 0x4ac   :  { %v1296_v45 = vpop.f32.mrb[9].mxu1 }
 0x4ad   :  { %v2159_v46 = vpop.f32.mrb[10].mxu1 }
 0x4ae   :  { %v1366_v49 = vmax.f32 %v2158_v44, %v2159_v46  ;;  %v1299_v51 = vpop.f32.mrb[11].mxu1 }
 0x4af   :  { %v1359_v36 = vmax.f32 %v1296_v45, %v1299_v51 }
 0x4b0   :  { %v1367_v52 = vrot.slane %v1366_v49, 4 }
 0x4b1   :  { %v1360_v53 = vrot.slane %v1359_v36, 4 }
 0x4b2   :  { %v1368_v54 = vmax.f32 %v1366_v49, %v1367_v52 }
 0x4b3   :  { %v1361_v55 = vmax.f32 %v1359_v36, %v1360_v53  ;;  %v2162_v56 = vpop.f32.mrb[12].mxu1 }
 0x4b4   :  { %v1369_v57 = vrot.slane %v1368_v54, 2  ;;  %v1312_v58 = vpop.f32.mrb[13].mxu1 }
 0x4b5   :  { %v1362_v59 = vrot.slane %v1361_v55, 2  ;;  %v2163_v60 = vpop.f32.mrb[14].mxu1 }
 0x4b6   :  { %v1370_v61 = vmax.f32 %v1368_v54, %v1369_v57  ;;  %v1380_v62 = vmax.f32 %v2162_v56, %v2163_v60  ;;  %v1315_v63 = vpop.f32.mrb[15].mxu1  ;;  %v100_v57 = vld [vmem:[%s3160_s2 + $0x10] sm:$0xff] }
 0x4b7   :  { %v1363_v1 = vmax.f32 %v1361_v55, %v1362_v59  ;;  %v1373_v2 = vmax.f32 %v1312_v58, %v1315_v63 }
 0x4b8   :  { %v1371_v3 = vrot.slane %v1370_v61, 1  ;;  %v1381_v4 = vrot.slane %v1380_v62, 4 }
 0x4b9   :  { %v1364_v5 = vrot.slane %v1363_v1, 1  ;;  %v1374_v6 = vrot.slane %v1373_v2, 4 }
 0x4ba   :  { %v1372_v7 = vmax.f32 %v1370_v61, %v1371_v3  ;;  %v1382_v8 = vmax.f32 %v1380_v62, %v1381_v4 }
 0x4bb   :  { %v1365_v9 = vmax.f32 %v1363_v1, %v1364_v5  ;;  %v1375_v10 = vmax.f32 %v1373_v2, %v1374_v6  ;;  %v3012_v11 = vpop.f32.mrb[16].mxu1  ;;  %v99_v5 = vld [vmem:[%s3160_s2 + $0x8] sm:$0xff] }
 0x4bc   :  { %v1417_v12 = vsub.f32 %v2158_v44, %v1372_v7  ;;  %v1418_v13 = vsub.f32 %v2159_v46, %v1372_v7  ;;  %v1383_v14 = vrot.slane %v1382_v8, 2  ;;  %v3014_v15 = vpop.f32.mrb[17].mxu1 }
 0x4bd   :  { %v1415_v16 = vsub.f32 %v1296_v45, %v1365_v9  ;;  %v1416_v17 = vsub.f32 %v1299_v51, %v1365_v9  ;;  %v1376_v18 = vrot.slane %v1375_v10, 2  ;;  %v3016_v19 = vpop.f32.mrb[18].mxu1 }
 0x4be   :  { %v1435_v20 = vmul.f32 1.442695, %v1417_v12  ;;  %v1437_v21 = vmul.f32 1.442695, %v1418_v13  ;;  %v1384_v22 = vmax.f32 %v1382_v8, %v1383_v14  ;;  %v1394_v23 = vmax.f32 %v3012_v11, %v3016_v19  ;;  %v3020_v24 = vpop.f32.mrb[19].mxu1 }
 0x4bf   :  { %v1431_v25 = vmul.f32 1.442695, %v1415_v16  ;;  %v1433_v26 = vmul.f32 1.442695, %v1416_v17  ;;  %v1377_v27 = vmax.f32 %v1375_v10, %v1376_v18  ;;  %v1387_v28 = vmax.f32 %v3014_v15, %v3020_v24 }
 0x4c0   :  { %2424 = vpow2.f32 %v1435_v20  ;;  %v1385_v29 = vrot.slane %v1384_v22, 1  ;;  %v1395_v30 = vrot.slane %v1394_v23, 4 }
 0x4c1   :  { %2426 = vpow2.f32 %v1437_v21  ;;  %v1378_v31 = vrot.slane %v1377_v27, 1  ;;  %v1388_v32 = vrot.slane %v1387_v28, 4 }
 0x4c2   :  { %2428 = vpow2.f32 %v1431_v25  ;;  %v1386_v33 = vmax.f32 %v1384_v22, %v1385_v29  ;;  %v1396_v34 = vmax.f32 %v1394_v23, %v1395_v30 }
 0x4c3   :  { %2430 = vpow2.f32 %v1433_v26  ;;  %v1379_v35 = vmax.f32 %v1377_v27, %v1378_v31  ;;  %v1389_v37 = vmax.f32 %v1387_v28, %v1388_v32  ;;  %v3024_v38 = vpop.f32.mrb[20].mxu1  ;;  %v104_v31 = vld [vmem:[%s3160_s2 + $0x30] sm:$0xff] }
 0x4c4   :  { %v1421_v39 = vsub.f32 %v2162_v56, %v1386_v33  ;;  %v1422_v0 = vsub.f32 %v2163_v60, %v1386_v33  ;;  %v1397_v40 = vrot.slane %v1396_v34, 2  ;;  %v3026_v41 = vpop.f32.mrb[21].mxu1  ;;  %v101_v60 = vld [vmem:[%s3160_s2 + $0x18] sm:$0xff] }
 0x4c5   :  { %v1419_v42 = vsub.f32 %v1312_v58, %v1379_v35  ;;  %v1420_v43 = vsub.f32 %v1315_v63, %v1379_v35  ;;  %v1390_v44 = vrot.slane %v1389_v37, 2  ;;  %v3028_v45 = vpop.f32.mrb[22].mxu1  ;;  %v98_v63 = vld [vmem:[%s3160_s2] sm:$0xff] }
 0x4c6   :  { %v1443_v46 = vmul.f32 1.442695, %v1421_v39  ;;  %v1445_v49 = vmul.f32 1.442695, %v1422_v0  ;;  %v1398_v51 = vmax.f32 %v1396_v34, %v1397_v40  ;;  %v1408_v36 = vmax.f32 %v3024_v38, %v3028_v45  ;;  %v3032_v52 = vpop.f32.mrb[23].mxu1  ;;  %v105_v39 = vld [vmem:[%s3160_s2 + $0x38] sm:$0xff] }
 0x4c7   :  { %v1439_v53 = vmul.f32 1.442695, %v1419_v42  ;;  %v1441_v54 = vmul.f32 1.442695, %v1420_v43  ;;  %v1391_v55 = vmax.f32 %v1389_v37, %v1390_v44  ;;  %v1401_v56 = vmax.f32 %v3026_v41, %v3032_v52  ;;  %v102_v0 = vld [vmem:[%s3160_s2 + $0x20] sm:$0xff] }
 0x4c8   :  { %2432 = vpow2.f32 %v1443_v46  ;;  %v1399_v58 = vrot.slane %v1398_v51, 1  ;;  %v1409_v59 = vrot.slane %v1408_v36, 4 }
 0x4c9   :  { %2434 = vpow2.f32 %v1445_v49  ;;  %v1392_v61 = vrot.slane %v1391_v55, 1  ;;  %v1402_v7 = vrot.slane %v1401_v56, 4 }
 0x4ca   :  { %v2425_v62 = vpop.eup %2424  ;;  %2436 = vpow2.f32 %v1439_v53  ;;  %v1400_v1 = vmax.f32 %v1398_v51, %v1399_v58  ;;  %v1410_v2 = vmax.f32 %v1408_v36, %v1409_v59  ;;  %v103_v51 = vld [vmem:[%s3160_s2 + $0x28] sm:$0xff] }
 0x4cb   :  { %v2427_v3 = vpop.eup %2426  ;;  %v1521_v4 = vmul.f32 %v2425_v62, %v100_v57  ;;  %2438 = vpow2.f32 %v1441_v54  ;;  %v3048_v6 = vmax.f32 %v1391_v55, %v1392_v61  ;;  %v1403_v32 = vmax.f32 %v1401_v56, %v1402_v7 }
 0x4cc   :  { %v2429_v8 = vpop.eup %2428  ;;  %v1470_v9 = vadd.f32 %v2427_v3, %v2425_v62  ;;  %v1522_v10 = vmul.f32 %v2427_v3, %v101_v60  ;;  %v1425_v12 = vsub.f32 %v3012_v11, %v1400_v1  ;;  %v1426_v13 = vsub.f32 %v3016_v19, %v1400_v1 }
 0x4cd   :  { %v2431_v14 = vpop.eup %2430  ;;  %v1519_v16 = vmul.f32 %v2429_v8, %v98_v63  ;;  %v1423_v17 = vsub.f32 %v3014_v15, %v3048_v6  ;;  %v1424_v18 = vsub.f32 %v3020_v24, %v3048_v6  ;;  %v1411_v20 = vrot.slane %v1410_v2, 2 }
 0x4ce   :  { %v1471_v21 = vrot.slane %v1470_v9, 4  ;;  %v1542_v22 = vadd.f32 %v1522_v10, %v1521_v4  ;;  %v1463_v23 = vadd.f32 %v2431_v14, %v2429_v8  ;;  %v1520_v25 = vmul.f32 %v2431_v14, %v99_v5  ;;  %v108_v10 = vld [vmem:[%s3160_s2 + $0x50] sm:$0xff] }
 0x4cf   :  { %v1451_v26 = vmul.f32 1.442695, %v1425_v12  ;;  %v1453_v27 = vmul.f32 1.442695, %v1426_v13  ;;  %v1412_v28 = vmax.f32 %v1410_v2, %v1411_v20  ;;  %v1447_v36 = vmul.f32 1.442695, %v1423_v17 }
 0x4d0   :  { %v1472_v29 = vadd.f32 %v1471_v21, %v1470_v9  ;;  %v1543_v11 = vrot.slane %v1542_v22, 4  ;;  %v1464_v30 = vrot.slane %v1463_v23, 4  ;;  %v1535_v19 = vadd.f32 %v1520_v25, %v1519_v16 }
 0x4d1   :  { %2440 = vpow2.f32 %v1451_v26  ;;  %v1413_v15 = vrot.slane %v1412_v28, 1  ;;  %v1404_v57 = vrot.slane %v1403_v32, 2  ;;  %v1449_v14 = vmul.f32 1.442695, %v1424_v18 }
 0x4d2   :  { %v2433_v24 = vpop.eup %2432  ;;  %v1473_v33 = vrot.slane %v1472_v29, 2  ;;  %v1544_v34 = vadd.f32 %v1543_v11, %v1542_v22  ;;  %v1465_v35 = vadd.f32 %v1464_v30, %v1463_v23  ;;  %v1536_v37 = vrot.slane %v1535_v19, 4  ;;  %v109_v23 = vld [vmem:[%s3160_s2 + $0x58] sm:$0xff] }
 0x4d3   :  { %v2435_v40 = vpop.eup %2434  ;;  %v1525_v42 = vmul.f32 %v2433_v24, %v104_v31  ;;  %2442 = vpow2.f32 %v1453_v27  ;;  %v1414_v61 = vmax.f32 %v1412_v28, %v1413_v15  ;;  %v1405_v27 = vmax.f32 %v1403_v32, %v1404_v57 }
 0x4d4   :  { %v2437_v43 = vpop.eup %2436  ;;  %v1474_v44 = vadd.f32 %v1473_v33, %v1472_v29  ;;  %v1466_v46 = vrot.slane %v1465_v35, 2  ;;  %v1537_v49 = vadd.f32 %v1536_v37, %v1535_v19  ;;  %v1484_v54 = vadd.f32 %v2435_v40, %v2433_v24 }
 0x4d5   :  { %v2439_v53 = vpop.eup %2438  ;;  %v1526_v55 = vmul.f32 %v2435_v40, %v105_v39  ;;  %v1523_v56 = vmul.f32 %v2437_v43, %v102_v0  ;;  %v1545_v59 = vrot.slane %v1544_v34, 2  ;;  %2444 = vpow2.f32 %v1447_v36 }
 0x4d6   :  { %v1475_v58 = vrot.slane %v1474_v44, 1  ;;  %v1467_v60 = vadd.f32 %v1466_v46, %v1465_v35  ;;  %v1485_v62 = vrot.slane %v1484_v54, 4  ;;  %v1477_v1 = vadd.f32 %v2439_v53, %v2437_v43 }
 0x4d7   :  { %v1556_v63 = vadd.f32 %v1526_v55, %v1525_v42  ;;  %v1524_v2 = vmul.f32 %v2439_v53, %v103_v51  ;;  %v1538_v5 = vrot.slane %v1537_v49, 2  ;;  %v1546_v12 = vadd.f32 %v1545_v59, %v1544_v34 }
 0x4d8   :  { %v1476_v3 = vadd.f32 %v1475_v58, %v1474_v44  ;;  %v1468_v4 = vrot.slane %v1467_v60, 1  ;;  %v1486_v6 = vadd.f32 %v1485_v62, %v1484_v54  ;;  %v1478_v8 = vrot.slane %v1477_v1, 4 }
 0x4d9   :  { %v1557_v7 = vrot.slane %v1556_v63, 4  ;;  %v1549_v9 = vadd.f32 %v1524_v2, %v1523_v56  ;;  %v1429_v26 = vsub.f32 %v3024_v38, %v1414_v61  ;;  %v1539_v29 = vadd.f32 %v1538_v5, %v1537_v49  ;;  %v106_v56 = vld [vmem:[%s3160_s2 + $0x40] sm:$0xff] }
 0x4da   :  { %2446 = vrcp.f32 %v1476_v3  ;;  %v1469_v13 = vadd.f32 %v1468_v4, %v1467_v60  ;;  %v1487_v17 = vrot.slane %v1486_v6, 2  ;;  %v1479_v21 = vadd.f32 %v1478_v8, %v1477_v1 }
 0x4db   :  { %v2441_v16 = vpop.eup %2440  ;;  %v1558_v20 = vadd.f32 %v1557_v7, %v1556_v63  ;;  %v1550_v22 = vrot.slane %v1549_v9, 4  ;;  %v1430_v15 = vsub.f32 %v3028_v45, %v1414_v61  ;;  %v1547_v24 = vrot.slane %v1546_v12, 1  ;;  %v107_v63 = vld [vmem:[%s3160_s2 + $0x48] sm:$0xff] }
 0x4dc   :  { %2448 = vrcp.f32 %v1469_v13  ;;  %v1529_v25 = vmul.f32 %v2441_v16, %v108_v10  ;;  %v1488_v11 = vadd.f32 %v1487_v17, %v1486_v6  ;;  %v1480_v30 = vrot.slane %v1479_v21, 2 }
 0x4dd   :  { %v2443_v28 = vpop.eup %2442  ;;  %v1551_v19 = vadd.f32 %v1550_v22, %v1549_v9  ;;  %2450 = vpow2.f32 %v1449_v14  ;;  %v1559_v34 = vrot.slane %v1558_v20, 2  ;;  %v1459_v40 = vmul.f32 1.442695, %v1429_v26 }
 0x4de   :  { %v1498_v18 = vadd.f32 %v2443_v28, %v2441_v16  ;;  %v1530_v31 = vmul.f32 %v2443_v28, %v109_v23  ;;  %v1489_v33 = vrot.slane %v1488_v11, 1  ;;  %v1481_v35 = vadd.f32 %v1480_v30, %v1479_v21  ;;  %v112_v21 = vld [vmem:[%s3160_s2 + $0x70] sm:$0xff] }
 0x4df   :  { %v1552_v37 = vrot.slane %v1551_v19, 2  ;;  %v1540_v38 = vrot.slane %v1539_v29, 1  ;;  %v2445_v43 = vpop.eup %2444  ;;  %2452 = vpow2.f32 %v1459_v40  ;;  %v1461_v49 = vmul.f32 1.442695, %v1430_v15 }
 0x4e0   :  { %v1499_v39 = vrot.slane %v1498_v18, 4  ;;  %v1570_v0 = vadd.f32 %v1530_v31, %v1529_v25  ;;  %v1490_v32 = vadd.f32 %v1489_v33, %v1488_v11  ;;  %v1482_v42 = vrot.slane %v1481_v35, 1 }
 0x4e1   :  { %v1548_v51 = vadd.f32 %v1547_v24, %v1546_v12  ;;  %v1560_v36 = vadd.f32 %v1559_v34, %v1558_v20  ;;  %v1553_v54 = vadd.f32 %v1552_v37, %v1551_v19  ;;  %v1406_v57 = vrot.slane %v1405_v27, 1 }
 0x4e2   :  { %v1500_v44 = vadd.f32 %v1499_v39, %v1498_v18  ;;  %v1571_v46 = vrot.slane %v1570_v0, 4  ;;  %2454 = vrcp.f32 %v1490_v32  ;;  %v1483_v45 = vadd.f32 %v1482_v42, %v1481_v35 }
 0x4e3   :  { %2456 = vpow2.f32 %v1461_v49  ;;  %v1541_v59 = vadd.f32 %v1540_v38, %v1539_v29  ;;  %v1407_v1 = vmax.f32 %v1405_v27, %v1406_v57  ;;  %v1561_v4 = vrot.slane %v1560_v36, 1 }
 0x4e4   :  { %v2447_v53 = vpop.eup %2446  ;;  %v1501_v55 = vrot.slane %v1500_v44, 2  ;;  %2458 = vrcp.f32 %v1483_v45  ;;  %v1572_v60 = vadd.f32 %v1571_v46, %v1570_v0  ;;  %v1527_v5 = vmul.f32 %v2445_v43, %v106_v56  ;;  %v110_v56 = vld [vmem:[%s3160_s2 + $0x60] sm:$0xff] }
 0x4e5   :  { %v1594_v58 = vmul.f32 %v2447_v53, %v1548_v51  ;;  %v1554_v7 = vrot.slane %v1553_v54, 1  ;;  %v1427_v9 = vsub.f32 %v3026_v41, %v1407_v1  ;;  %v1428_v10 = vsub.f32 %v3032_v52, %v1407_v1  ;;  %v113_v52 = vld [vmem:[%s3160_s2 + $0x78] sm:$0xff] }
 0x4e6   :  { %v2449_v61 = vpop.eup %2448  ;;  %v1502_v62 = vadd.f32 %v1501_v55, %v1500_v44  ;;  %v1573_v13 = vrot.slane %v1572_v60, 2  ;;  %v1562_v41 = vadd.f32 %v1561_v4, %v1560_v36 }
 0x4e7   :  { %v1608_v2 = vpack.c.bf16 %v1594_v58, %v1594_v58  ;;  %v1592_v3 = vmul.f32 %v2449_v61, %v1541_v59  ;;  %v2451_v6 = vpop.eup %2450  ;;  %v1455_v22 = vmul.f32 1.442695, %v1427_v9  ;;  %v1457_v23 = vmul.f32 1.442695, %v1428_v10  ;;  %v111_v59 = vld [vmem:[%s3160_s2 + $0x68] sm:$0xff] }
 0x4e8   :  { %v1503_v8 = vrot.slane %v1502_v62, 1  ;;  %v1491_v14 = vadd.f32 %v2451_v6, %v2445_v43  ;;  %v1528_v16 = vmul.f32 %v2451_v6, %v107_v63  ;;  %v1555_v29 = vadd.f32 %v1554_v7, %v1553_v54 }
 0x4e9   :  { %v1607_v12 = vpack.c.bf16 %v1592_v3, %v1592_v3  ;;  %v1625_v17 = vunpack.c.l.b16 %v1608_v2  ;;  %v2453_v28 = vpop.eup %2452  ;;  %v1574_v15 = vadd.f32 %v1573_v13, %v1572_v60 }
 0x4ea   :  { %v1504_v20 = vadd.f32 %v1503_v8, %v1502_v62  ;;  %v1492_v26 = vrot.slane %v1491_v14, 4  ;;  %v1563_v27 = vadd.f32 %v1528_v16, %v1527_v5  ;;  %v1533_v18 = vmul.f32 %v2453_v28, %v112_v21 }
 0x4eb   :  { %v1624_v25 = vunpack.c.l.b16 %v1607_v12  ;;  %v1575_v43 = vrot.slane %v1574_v15, 1 }
 0x4ec   :  { %2460 = vrcp.f32 %v1504_v20  ;;  %v2455_v11 = vpop.eup %2454  ;;  %v1493_v30 = vadd.f32 %v1492_v26, %v1491_v14  ;;  %v1564_v19 = vrot.slane %v1563_v27, 4 }
 0x4ed   :  { %2462 = vpow2.f32 %v1455_v22  ;;  %v2457_v31 = vpop.eup %2456  ;;  %v1598_v24 = vmul.f32 %v2455_v11, %v1562_v41  ;;  %v1633_v33 = vsel %vm1632_vm3, %v1625_v17, %v1624_v25  ;;  %v1576_v60 = vadd.f32 %v1575_v43, %v1574_v15 }
 0x4ee   :  { %2464 = vpow2.f32 %v1457_v23  ;;  %v2459_v34 = vpop.eup %2458  ;;  %v1494_v35 = vrot.slane %v1493_v30, 2  ;;  %v1512_v37 = vadd.f32 %v2457_v31, %v2453_v28  ;;  %v1534_v39 = vmul.f32 %v2457_v31, %v113_v52 }
 0x4ef   :  { %v1596_v0 = vmul.f32 %v2459_v34, %v1555_v29  ;;  %v1565_v40 = vadd.f32 %v1564_v19, %v1563_v27  ;;  %v1610_v46 = vpack.c.bf16 %v1598_v24, %v1598_v24 }
 0x4f0   :  { %v1495_v38 = vadd.f32 %v1494_v35, %v1493_v30  ;;  %v1513_v32 = vrot.slane %v1512_v37, 4  ;;  %v1584_v42 = vadd.f32 %v1534_v39, %v1533_v18 }
 0x4f1   :  { %v1609_v44 = vpack.c.bf16 %v1596_v0, %v1596_v0  ;;  %v1566_v45 = vrot.slane %v1565_v40, 2  ;;  %v1627_v61 = vunpack.c.l.b16 %v1610_v46 }
 0x4f2   :  { %v1496_v49 = vrot.slane %v1495_v38, 1  ;;  %v1514_v51 = vadd.f32 %v1513_v32, %v1512_v37  ;;  %v1585_v36 = vrot.slane %v1584_v42, 4 }
 0x4f3   :  { %v1626_v53 = vunpack.c.l.b16 %v1609_v44  ;;  %v1567_v3 = vadd.f32 %v1566_v45, %v1565_v40  ;;  %v173_v45 = vld [vmem:[%s3171_s13] sm:$0x3]  ;;  %s1903_s13 = sshll.u32 %s2628_s24, 4  ;;  %s3102_s13 = int_to_ptr.vmem [resolvable:$true] %s1903_s13 }
 0x4f4   :  { %v1497_v54 = vadd.f32 %v1496_v49, %v1495_v38  ;;  %v1515_v55 = vrot.slane %v1514_v51, 2  ;;  %v1586_v58 = vadd.f32 %v1585_v36, %v1584_v42  ;;  %v1894_v36 = vld [vmem:[#allocation5 + $0x8] sm:$0xff] }
 0x4f5   :  { %v1635_v62 = vsel %vm1634_vm4, %v1626_v53, %v1633_v33  ;;  %v1568_v16 = vrot.slane %v1567_v3, 1  ;;  %1896 = vst [vmem:[#allocation11 + $0x8] sm:$0xff] %v1894_v36  ;;  %v182_v53 = vrot.slane %v173_v45, %v138_v50 }
 0x4f6   :  { %v2461_v57 = vpop.eup %2460  ;;  %2466 = vrcp.f32 %v1497_v54  ;;  %v1516_v1 = vadd.f32 %v1515_v55, %v1514_v51  ;;  %v1637_v6 = vsel %vm1636_vm5, %v1627_v61, %v1635_v62  ;;  %v1587_v10 = vrot.slane %v1586_v58, 2 }
 0x4f7   :  { %v2463_v63 = vpop.eup %2462  ;;  %v1602_v5 = vmul.f32 %v2461_v57, %v1576_v60  ;;  %v1569_v23 = vadd.f32 %v1568_v16, %v1567_v3  ;;  %v178_v62 = vrot.slane %v173_v45, %v2784_v48 }
 0x4f8   :  { %v2465_v2 = vpop.eup %2464  ;;  %v1531_v4 = vmul.f32 %v2463_v63, %v110_v56  ;;  %v1517_v7 = vrot.slane %v1516_v1, 1  ;;  %v1588_v21 = vadd.f32 %v1587_v10, %v1586_v58 }
 0x4f9   :  { %v1505_v8 = vadd.f32 %v2465_v2, %v2463_v63  ;;  %v1532_v9 = vmul.f32 %v2465_v2, %v111_v59  ;;  %v1612_v52 = vpack.c.bf16 %v1602_v5, %v1602_v5 }
 0x4fa   :  { %v1518_v12 = vadd.f32 %v1517_v7, %v1516_v1  ;;  %v1589_v28 = vrot.slane %v1588_v21, 1 }
 0x4fb   :  { %v1506_v13 = vrot.slane %v1505_v8, 4  ;;  %v1577_v14 = vadd.f32 %v1532_v9, %v1531_v4  ;;  %v1629_v24 = vunpack.c.l.b16 %v1612_v52 }
 0x4fc   :  { %2468 = vrcp.f32 %v1518_v12  ;;  %v1590_v18 = vadd.f32 %v1589_v28, %v1588_v21 }
 0x4fd   :  { %v1507_v17 = vadd.f32 %v1506_v13, %v1505_v8  ;;  %v1578_v20 = vrot.slane %v1577_v14, 4 }
 0x4ff   :  { %v1508_v22 = vrot.slane %v1507_v17, 2  ;;  %v1579_v25 = vadd.f32 %v1578_v20, %v1577_v14 }
 0x500   :  { %v2467_v26 = vpop.eup %2466 }
 0x501   :  { %v1509_v27 = vadd.f32 %v1508_v22, %v1507_v17  ;;  %v1600_v41 = vmul.f32 %v2467_v26, %v1569_v23  ;;  %v1580_v11 = vrot.slane %v1579_v25, 2 }
 0x503   :  { %v1510_v29 = vrot.slane %v1509_v27, 1  ;;  %v1611_v30 = vpack.c.bf16 %v1600_v41, %v1600_v41  ;;  %v1581_v33 = vadd.f32 %v1580_v11, %v1579_v25 }
 0x505   :  { %v1511_v19 = vadd.f32 %v1510_v29, %v1509_v27  ;;  %v1628_v31 = vunpack.c.l.b16 %v1611_v30  ;;  %v1582_v39 = vrot.slane %v1581_v33, 1 }
 0x506   :  { %v2469_v15 = vpop.eup %2468 }
 0x507   :  { %2470 = vrcp.f32 %v1511_v19  ;;  %v1606_v34 = vmul.f32 %v2469_v15, %v1590_v18  ;;  %v1639_v35 = vsel %vm1638_vm6, %v1628_v31, %v1637_v6  ;;  %v1583_v0 = vadd.f32 %v1582_v39, %v1581_v33 }
 0x508   :  { %v1641_v37 = vsel %vm1640_vm7, %v1629_v24, %v1639_v35 }
 0x509   :  { %v1614_v32 = vpack.c.bf16 %v1606_v34, %v1606_v34 }
 0x50b   :  { %v1631_v44 = vunpack.c.l.b16 %v1614_v32 }
 0x511   :  { %v2471_v40 = vpop.eup %2470 }
 0x512   :  { %v1604_v38 = vmul.f32 %v2471_v40, %v1583_v0 }
 0x514   :  { %v1613_v42 = vpack.c.bf16 %v1604_v38, %v1604_v38 }
 0x516   :  { %v1630_v43 = vunpack.c.l.b16 %v1613_v42 }
 0x518   :  { %v1643_v46 = vsel %vm1642_vm8, %v1630_v43, %v1641_v37 }
 0x519   :  { %v1645_v49 = vsel %vm1644_vm9, %v1631_v44, %v1643_v46 }
 0x51a   :  { %v1646_v51 = vpack.c.b16 %v1645_v49, %v1645_v49 }
 0x51c   :  { %1873 = vmatmul.mubr.bf16.vlgmr.msra.gmra.mrb[8].mxu0 %v1646_v51 }
 0x5ef   :  { %v1874_v54 = vpop.f32.mrb[8].mxu0 }
 0x5f0   :  { %v1876_v55 = vpop.f32.mrb[9].mxu0  ;;  %v1875_v63 = vadd.f32 %v1874_v54, %v178_v62 }
 0x5f1   :  { %v1877_v56 = vadd.f32 %v1876_v55, %v182_v53  ;;  %v1878_v57 = vpop.f32.mrb[10].mxu0 }
 0x5f2   :  { %v1879_v58 = vpop.f32.mrb[11].mxu0 }
 0x5f3   :  { %v2094_v59 = vmul.f32 -1.442695, %v1877_v56 }
 0x5f5   :  { %2472 = vpow2.f32 %v2094_v59 }
 0x5ff   :  { %v2473_v60 = vpop.eup %2472 }
 0x600   :  { %v1884_v61 = vadd.f32 1.0, %v2473_v60 }
 0x602   :  { %2474 = vrcp.f32 %v1884_v61 }
 0x60c   :  { %v2475_v1 = vpop.eup %2474 }
 0x60d   :  { %v1887_v47 = vmul.f32 %v2475_v1, %v1875_v63 }
 0x60f   :  { %1891 = vst [vmem:[#allocation9 + $0x8] sm:$0xff] %v1887_v47  ;;  %1888 = vst [vmem:[#allocation8] sm:$0xff] %v1887_v47 }
 0x610   :  { %2553 = shalt.err (!%p2550_p0)
}
 0x611   :  { %s2554_s29 = scalar_lea.hbm %s3174_s16, 256 }
 0x612   :  { %p2555_p1 = scmp.ne.s32.totalorder %s3174_s16, %s2554_s29  ;;  %p2558_p2 = scmp.lt.u32.totalorder %s2554_s29, %s3174_s16 }
 0x614   :  { %p2560_p3 = pnand %p2558_p2, %p2555_p1 }
 0x616   :  { %2563 = shalt.err (!%p2560_p3)
}
 0x617   :  { %1918 = dma.vmem_to_hbm [thread:$0]  %s1913_s23, 256, %s3174_s16, [#allocation10], %s2618_s21, %s2618_s21, %s2619_s22  }
 0x618   :  { %s2564_s12 = scalar_lea.vmem %s3102_s13, 128  ;;  %p2569_p5 = scmp.lt.s32.totalorder %s3102_s13, %s3102_s13 }
 0x619   :  { %p2565_p4 = scmp.ne.s32.totalorder %s3102_s13, %s2564_s12  ;;  %p2570_p6 = scmp.lt.s32.totalorder %s2564_s12, %s2564_s12 }
 0x61b   :  { %p2571_p7 = por %p2570_p6, %p2569_p5 }
 0x61d   :  { %p2572_p8 = pnand %p2571_p7, %p2565_p4 }
 0x61f   :  { %2575 = shalt.err (!%p2572_p8)
}
 0x620   :  { %s2576_s4 = scalar_lea.hbm %s3173_s15, 128 }
 0x621   :  { %p2577_p9 = scmp.ne.s32.totalorder %s3173_s15, %s2576_s4  ;;  %p2580_p10 = scmp.lt.u32.totalorder %s2576_s4, %s3173_s15 }
 0x623   :  { %p2582_p11 = pnand %p2580_p10, %p2577_p9 }
 0x625   :  { %2585 = shalt.err (!%p2582_p11)
}
 0x626   :  { %1906 = dma.vmem_to_hbm [thread:$0]  %s3102_s13, 128, %s3173_s15, [#allocation4]  }
 0x627   :  { %s2586_s25 = scalar_lea.vmem %s3104_s8, 256  ;;  %p2591_p13 = scmp.lt.s32.totalorder %s3104_s8, %s3104_s8 }
 0x628   :  { %p2587_p12 = scmp.ne.s32.totalorder %s3104_s8, %s2586_s25  ;;  %p2592_p0 = scmp.lt.s32.totalorder %s2586_s25, %s2586_s25 }
 0x62a   :  { %p2593_p1 = por %p2592_p0, %p2591_p13 }
 0x62c   :  { %p2594_p2 = pnand %p2593_p1, %p2587_p12 }
 0x62e   :  { %2597 = shalt.err (!%p2594_p2)
}
 0x62f   :  { %s2598_s24 = scalar_lea.hbm %s3175_s17, 256 }
 0x630   :  { %p2599_p3 = scmp.ne.s32.totalorder %s3175_s17, %s2598_s24  ;;  %p2602_p4 = scmp.lt.u32.totalorder %s2598_s24, %s3175_s17 }
 0x632   :  { %p2604_p5 = pnand %p2602_p4, %p2599_p3 }
 0x634   :  { %2607 = shalt.err (!%p2604_p5)
}
 0x635   :  { %1930 = dma.vmem_to_hbm [thread:$0]  %s3104_s8, 256, %s3175_s17, [#allocation10], %s2618_s21, %s2618_s21, %s2619_s22  }
 0x636   :  { %2612 = dma.done.wait [#allocation4], 128  }
 0x637   :  { %2613 = vsyncadd [#allocation4], 4294967168 }
 0x638   :  { %2614 = dma.done.wait [#allocation10], 512  }
 0x639   :  { %2615 = vsyncadd [#allocation10], 4294966784 }
 0x63a   :  { %1940 = vsyncpa [#allocation3], 1 }
 0x63b   :  { %1941 = vsyncpa [#allocation6], 1 }
 0x63c   :  { %1942 = vsyncpa [#allocation4], 1 }
 0x63d   :  { %1943 = vsyncpa [#allocation10], 1 }

</bundles_post_ra>
